<compile_context>
chip_gen: v7x
topology: tpu7x:2x2x1
jax: 0.10.0
libtpu: 0.0.40
codegen_flags: <defaults>
</compile_context>

<pallas_src>
import functools

import jax
import jax.numpy as jnp
from jax import lax
from jax.experimental import pallas as pl
from jax.experimental.pallas import tpu as pltpu


# ---------------------------------------------------------------------------
# Kernel
# ---------------------------------------------------------------------------
def _vq_kernel(z_ref, cbh_ref, cbl_ref, cbsq_ref, prob_ref, zq_ref, *,
               inv_ts, exp_dtype):
    """One (batch, spatial-tile) step of the VQ forward.

    z_ref    : (D, T)  f32   NCHW slab: D channels x T spatial positions
    cbh_ref  : (D, K)  bf16  codebook (transposed), bf16 "hi" part
    cbl_ref  : (D, K)  bf16  codebook residual (cb - hi) in bf16
    cbsq_ref : (1, K)  f32   exact ||codebook||^2 (hoisted to the wrapper)
    prob_ref : (T, K)        softmax(-d / jsd_ts)          (distance_prob tile)
    zq_ref   : (D, T)  f32   nearest codebook vectors, already in NCHW layout
    """
    cbh = cbh_ref[...]                                            # (D, K) bf16

    # (D, T) -> (T, D): small (D*T element) XLU transpose, hidden behind the
    # (T, K)-sized MXU/VPU/EUP work below.
    z_td = pltpu.einshape("dt->td", z_ref[...]).astype(jnp.bfloat16)

    # cross = z . cb on the MXU (bf16 operands, f32 accumulation).
    cross = jnp.dot(z_td, cbh, preferred_element_type=jnp.float32)  # (T, K)

    # d = ||z||^2 + ||cb||^2 - 2*cross.  softmax(-d/ts) and argmin(d) are both
    # invariant to the per-row constant ||z||^2, so it is dropped here.
    logits = (2.0 * cross - cbsq_ref[...]) * inv_ts                 # (T, K) f32

    # softmax(logits) == softmax(-d / jsd_ts).  exp in bf16 on v6e/v7x (EUP),
    # f32 on v5e; denominator accumulated in f32 either way.
    m = jnp.max(logits, axis=1, keepdims=True)                      # (T, 1)
    e = jnp.exp((logits - m).astype(exp_dtype))
    e_f32 = e.astype(jnp.float32)
    denom = jnp.sum(e_f32, axis=1, keepdims=True)
    prob_ref[...] = (e_f32 * pl.reciprocal(denom, approx=True)
                     ).astype(prob_ref.dtype)

    # argmin(d) == argmax(logits); reuse the softmax row-max m and take the
    # first index achieving it (matches torch.argmin tie-breaking).
    t, k = logits.shape
    iota_k = lax.broadcasted_iota(jnp.int32, (t, k), 1)
    idx = jnp.min(jnp.where(logits == m, iota_k, k), axis=1, keepdims=True)
    one_hot = (iota_k == idx).astype(jnp.bfloat16)                  # (T, K)

    # One-hot gather of codebook rows as two bf16 MXU matmuls (hi + lo split;
    # exact to ~f32 rounding since one_hot is exactly 0/1), emitted directly
    # in the (D, T) NCHW block layout (lane-dense writeback).
    nt = (((1,), (1,)), ((), ()))
    zq = lax.dot_general(cbh, one_hot, nt, preferred_element_type=jnp.float32)
    zq = zq + lax.dot_general(cbl_ref[...], one_hot, nt,
                              preferred_element_type=jnp.float32)
    zq_ref[...] = zq.astype(zq_ref.dtype)


# ---------------------------------------------------------------------------
# Tiling / hardware configuration
# ---------------------------------------------------------------------------
def _round_up(x, m):
    return ((x + m - 1) // m) * m


def _tpu_config():
    """(generation, vmem_limit_bytes, exp_dtype) for the attached TPU."""
    kind = ""
    try:
        dev = jax.devices()[0]
        if dev.platform == "tpu":
            kind = dev.device_kind.lower()
    except Exception:
        pass
    if "v5 lite" in kind or "v5e" in kind or "v5lite" in kind:
        gen = "v5e"
    elif "v6" in kind:
        gen = "v6e"
    elif "v7" in kind:
        gen = "v7x"
    else:
        gen = "unknown"

    vmem_cap = None
    try:
        vmem_cap = int(pltpu.get_tpu_info().vmem_capacity_bytes)
    except Exception:
        vmem_cap = None
    if vmem_cap is None:
        vmem_cap = (64 << 20) if gen in ("v7x", "unknown") else (128 << 20)

    if gen in ("v5e", "v6e"):            # 128 MiB parts: go big
        limit = min(100 << 20, vmem_cap - (16 << 20))
    elif gen == "v7x":                   # 64 MiB per TensorCore
        limit = min(52 << 20, vmem_cap - (12 << 20))
    else:                                # conservative default
        limit = min(48 << 20, (vmem_cap * 3) // 4)
    limit = max(16 << 20, limit)

    exp_dtype = jnp.bfloat16 if gen in ("v6e", "v7x") else jnp.float32
    return gen, limit, exp_dtype


def _vmem_bytes_estimate(t, D, K, prob_bytes):
    """Conservative per-step VMEM high-water estimate (lane/sublane padded)."""
    Kp = _round_up(K, 128)
    Dp8 = _round_up(D, 8)
    Dp128 = _round_up(D, 128)
    t8 = _round_up(t, 8)
    t128 = _round_up(t, 128)
    # Constant-index blocks (codebook hi/lo bf16 + ||cb||^2), charged with the
    # pipeline's 2x buffering even though they are never re-fetched.
    resident = 2 * (2 * Dp8 * Kp * 2 + 8 * Kp * 4)
    # Double-buffered pipelined I/O blocks.
    io = 2 * (Dp8 * t128 * 4            # z    (D, T) f32
              + t8 * Kp * prob_bytes    # prob (T, K)
              + Dp8 * t128 * 4)         # z_q  (D, T) f32
    # Live temporaries: logits / e / iota / where results ((T,K) f32|i32),
    # one_hot bf16, transposed z (f32 + bf16), z_q f32 accumulators.
    temps = (4 * t8 * Kp * 4 + t8 * Kp * 2
             + t8 * Dp128 * 6 + 2 * Dp8 * t128 * 4)
    return resident + io + temps


def _choose_tile_hw(HW, B, D, K, target, prob_bytes, budget_bytes, gen):
    """Spatial tile: a multiple of 128 that divides H*W and fits VMEM."""
    if HW <= 128 or HW % 128 != 0:
        # Block == full spatial extent (always legal w.r.t. the (8,128) rule).
        # TODO(synk): ragged spatial tiling (in-kernel masked stores) for very
        # large non-128-multiple H*W; power-of-two feature maps never hit this.
        return HW
    t = max(128, (min(int(target), HW) // 128) * 128)
    while t > 128 and (HW % t != 0
                       or _vmem_bytes_estimate(t, D, K, prob_bytes) > budget_bytes):
        t -= 128
    if HW % t != 0:
        t = 128
    # v7x megacore: keep the total step count even so both TensorCores get work.
    if gen == "v7x" and (B * (HW // t)) % 2 == 1 and t % 256 == 0:
        t //= 2
    return t


# ---------------------------------------------------------------------------
# Wrapper (eval-mode EMACodebook.forward)
# ---------------------------------------------------------------------------
def ema_codebook_forward(z, codebook_weight, *, beta=0.25, jsd_ts=1.0,
                         tile_hw=1024, prob_dtype=jnp.bfloat16,
                         vmem_limit_bytes=None):
    """Eval-mode forward of EMACodebook.

    z                : (B, D, H, W) float32 (NCHW, as in the PyTorch module)
    codebook_weight  : (K, D)       float32
    Returns (z_q, output_dict, distance_prob): z_q is NCHW, distance_prob is
    (B*H*W, K), mirroring the PyTorch module.
    """
    B, D, H, W = z.shape
    K = codebook_weight.shape[0]
    HW = H * W

    gen, limit, exp_dtype = _tpu_config()
    if vmem_limit_bytes is not None:
        limit = int(vmem_limit_bytes)

    z = z.astype(jnp.float32)
    cb = codebook_weight.astype(jnp.float32)

    # One-time codebook prep (hoisted out of the grid loop): bf16 hi/lo split,
    # transposed to (D, K) so every in-kernel matmul is a plain NN/NT form,
    # plus the exact f32 ||cb||^2 row used in the distance.
    cb_hi = cb.astype(jnp.bfloat16)                                 # (K, D)
    cb_lo = (cb - cb_hi.astype(jnp.float32)).astype(jnp.bfloat16)   # (K, D)
    cb_hi_dk = jnp.transpose(cb_hi)                                 # (D, K)
    cb_lo_dk = jnp.transpose(cb_lo)                                 # (D, K)
    cb_sq = jnp.sum(cb * cb, axis=1)[None, :]                       # (1, K)

    prob_bytes = jnp.dtype(prob_dtype).itemsize
    budget = max(8 << 20, limit - (4 << 20))
    t = _choose_tile_hw(HW, B, D, K, tile_hw, prob_bytes, budget, gen)
    grid = (B, HW // t)

    z3 = z.reshape(B, D, HW)          # metadata-only reshape (no HBM pass)

    kernel = functools.partial(_vq_kernel, inv_ts=1.0 / float(jsd_ts),
                               exp_dtype=exp_dtype)

    prob, z_q3 = pl.pallas_call(
        kernel,
        out_shape=(
            jax.ShapeDtypeStruct((B, HW, K), prob_dtype),    # distance_prob
            jax.ShapeDtypeStruct((B, D, HW), jnp.float32),   # z_q (NCHW layout)
        ),
        grid_spec=pltpu.PrefetchScalarGridSpec(
            num_scalar_prefetch=0,
            grid=grid,
            in_specs=[
                pl.BlockSpec((None, D, t), lambda b, j: (b, 0, j)),   # z slab
                pl.BlockSpec((D, K), lambda b, j: (0, 0)),            # cb hi
                pl.BlockSpec((D, K), lambda b, j: (0, 0)),            # cb lo
                pl.BlockSpec((1, K), lambda b, j: (0, 0)),            # ||cb||^2
            ],
            out_specs=[
                pl.BlockSpec((None, t, K), lambda b, j: (b, j, 0)),   # prob
                pl.BlockSpec((None, D, t), lambda b, j: (b, 0, j)),   # z_q
            ],
        ),
        compiler_params=pltpu.CompilerParams(
            dimension_semantics=("parallel", "parallel"),
            vmem_limit_bytes=int(limit)),
    )(z3, cb_hi_dk, cb_lo_dk, cb_sq)

    distance_prob = prob.reshape(B * HW, K)     # free reshape
    z_q = z_q3.reshape(B, D, H, W)              # free reshape, already NCHW

    # commitment_loss = F.mse_loss(z_norm, z_q.detach()); the mean runs over
    # the same element set as the (N, D) view, so it is taken directly on NCHW.
    commitment_loss = jnp.mean(jnp.square(z - lax.stop_gradient(z_q)))
    q_loss = beta * commitment_loss

    # Straight-through estimator z + sg(z_q - z) is a value-level identity in
    # the forward pass, so z_q is returned as-is (no extra HBM pass).
    # TODO(synk): a custom_vjp would be needed to reproduce training gradients.

    output = {
        "vq-loss": q_loss,
        "codebook-sum": jnp.sum(jnp.abs(codebook_weight)),
    }
    # TODO(synk): output['jsd'] / output['entropy'] use JSDLoss / EntropyLoss
    # classes that are not defined in the reference source; not reproduced.
    # TODO(synk): training-mode paths (EMA update, restart/split, kmeans init)
    # are stateful host-side logic and not part of this eval-mode kernel.

    return z_q, output, distance_prob


if __name__ == "__main__":
    # Small shapes consistent with the module: input (b, embed_dim, h, w).
    B, D, H, W = 2, 32, 16, 16          # latent_dim = 32
    K = 128                             # num_codebook_vectors

    key = jax.random.PRNGKey(0)
    k_z, k_w = jax.random.split(key)
    z = jax.random.normal(k_z, (B, D, H, W), dtype=jnp.float32)
    # EmbeddingEMA init: uniform_(-1/K, 1/K)
    codebook_weight = jax.random.uniform(
        k_w, (K, D), dtype=jnp.float32, minval=-1.0 / K, maxval=1.0 / K)

    # tile_hw=128 at this tiny size -> grid (2, 2): exercises both the batch
    # and the spatial tiling (even step count for megacore). Default 1024 for
    # real sizes.
    z_q, output, distance_prob = ema_codebook_forward(
        z, codebook_weight, beta=0.25, jsd_ts=1.0, tile_hw=128)

    jax.block_until_ready((z_q, output["vq-loss"], output["codebook-sum"],
                           distance_prob))

    assert z_q.shape == (B, D, H, W)
    assert distance_prob.shape == (B * H * W, K)

    # Light sanity checks (prob stored in bf16 + approx reciprocal).
    p32 = distance_prob.astype(jnp.float32)
    assert bool(jnp.all(jnp.isfinite(p32)))
    assert bool(jnp.all(jnp.abs(jnp.sum(p32, axis=1) - 1.0) < 0.05))
    assert bool(jnp.isfinite(output["vq-loss"]))

    # Every quantized vector must coincide with some codebook entry (the hi/lo
    # split gather is exact to ~f32 rounding).
    zq_rows = jnp.transpose(z_q, (0, 2, 3, 1)).reshape(-1, D)
    err = jnp.min(
        jnp.max(jnp.abs(zq_rows[:, None, :] - codebook_weight[None, :, :]),
                axis=-1), axis=-1)
    assert bool(jnp.all(err < 1e-3))

    print("KERNEL_OK")
</pallas_src>

<mosaic_0001>
module attributes {stable_mosaic.version = 11 : i64} {
  func.func @_vq_kernel(%arg0: i32, %arg1: i32, %arg2: memref<1x32x128xf32, #tpu.memory_space<vmem>>, %arg3: memref<32x128xbf16, #tpu.memory_space<vmem>>, %arg4: memref<32x128xbf16, #tpu.memory_space<vmem>>, %arg5: memref<1x128xf32, #tpu.memory_space<vmem>>, %arg6: memref<1x128x128xbf16, #tpu.memory_space<vmem>>, %arg7: memref<1x32x128xf32, #tpu.memory_space<vmem>>) attributes {dimension_semantics = [#tpu.dimension_semantics<parallel>, #tpu.dimension_semantics<parallel>], iteration_bounds = array<i64: 2, 2>, scalar_prefetch = 0 : i64, scratch_operands = 0 : i64, tpu.core_type = #tpu.core_type<tc>, window_params = [{transform_indices = @transform_0, window_bounds = array<i64: 1, 32, 128>}, {pipeline_mode = #tpu.pipeline_mode<synchronous>, transform_indices = @transform_1, window_bounds = array<i64: 32, 128>}, {pipeline_mode = #tpu.pipeline_mode<synchronous>, transform_indices = @transform_2, window_bounds = array<i64: 32, 128>}, {pipeline_mode = #tpu.pipeline_mode<synchronous>, transform_indices = @transform_3, window_bounds = array<i64: 1, 128>}, {transform_indices = @transform_4, window_bounds = array<i64: 1, 128, 128>}, {transform_indices = @transform_5, window_bounds = array<i64: 1, 32, 128>}]} {
    %c0 = arith.constant 0 : index
    %c0_0 = arith.constant 0 : index
    %0 = vector.load %arg3[%c0, %c0_0] : memref<32x128xbf16, #tpu.memory_space<vmem>>, vector<32x128xbf16>
    %c0_1 = arith.constant 0 : index
    %c0_2 = arith.constant 0 : index
    %c0_3 = arith.constant 0 : index
    %1 = vector.load %arg2[%c0_1, %c0_2, %c0_3] : memref<1x32x128xf32, #tpu.memory_space<vmem>>, vector<1x32x128xf32>
    %2 = vector.shape_cast %1 : vector<1x32x128xf32> to vector<32x128xf32>
    %3 = tpu.transpose %2, [1, 0] : vector<32x128xf32> -> vector<128x32xf32>
    %4 = arith.truncf %3 : vector<128x32xf32> to vector<128x32xbf16>
    %cst = arith.constant dense<0.000000e+00> : vector<128x128xf32>
    %5 = tpu.matmul %4, %0, %cst {dimension_numbers = #tpu.dot_dimension_numbers<[1], [0], [0], [1], [0, 0, 1, 1], [], []>} : vector<128x32xbf16>, vector<32x128xbf16>, vector<128x128xf32> -> vector<128x128xf32>
    %cst_4 = arith.constant 2.000000e+00 : f32
    %6 = vector.broadcast %cst_4 : f32 to vector<128x128xf32>
    %7 = arith.mulf %6, %5 : vector<128x128xf32>
    %c0_5 = arith.constant 0 : index
    %c0_6 = arith.constant 0 : index
    %8 = vector.load %arg5[%c0_5, %c0_6] : memref<1x128xf32, #tpu.memory_space<vmem>>, vector<1x128xf32>
    %9 = vector.broadcast %8 : vector<1x128xf32> to vector<128x128xf32>
    %10 = arith.subf %7, %9 : vector<128x128xf32>
    %cst_7 = arith.constant 1.000000e+00 : f32
    %11 = vector.broadcast %cst_7 : f32 to vector<128x128xf32>
    %12 = arith.mulf %10, %11 : vector<128x128xf32>
    %cst_8 = arith.constant dense<0xFF800000> : vector<128xf32>
    %13 = vector.multi_reduction <maximumf>, %12, %cst_8 [1] : vector<128x128xf32> to vector<128xf32>
    %14 = vector.shape_cast %13 : vector<128xf32> to vector<128x1xf32>
    %15 = vector.broadcast %14 : vector<128x1xf32> to vector<128x128xf32>
    %16 = arith.subf %12, %15 : vector<128x128xf32>
    %17 = math.exp %16 : vector<128x128xf32>
    %cst_9 = arith.constant dense<0.000000e+00> : vector<128xf32>
    %18 = vector.multi_reduction <add>, %17, %cst_9 [1] : vector<128x128xf32> to vector<128xf32>
    %19 = vector.shape_cast %18 : vector<128xf32> to vector<128x1xf32>
    %20 = tpu.reciprocal %19 {approx = true} : vector<128x1xf32> -> vector<128x1xf32>
    %21 = vector.broadcast %20 : vector<128x1xf32> to vector<128x128xf32>
    %22 = arith.mulf %17, %21 : vector<128x128xf32>
    %23 = arith.truncf %22 : vector<128x128xf32> to vector<128x128xbf16>
    %c0_10 = arith.constant 0 : index
    %c0_11 = arith.constant 0 : index
    %c0_12 = arith.constant 0 : index
    %24 = vector.load %arg6[%c0_10, %c0_11, %c0_12] : memref<1x128x128xbf16, #tpu.memory_space<vmem>>, vector<1x128x128xbf16>
    %25 = vector.shape_cast %24 : vector<1x128x128xbf16> to vector<128x128xbf16>
    %26 = vector.shape_cast %23 : vector<128x128xbf16> to vector<1x128x128xbf16>
    tpu.vector_store %arg6[%c0_10, %c0_11, %c0_12], %26 {strides = array<i32>} : memref<1x128x128xbf16, #tpu.memory_space<vmem>>, vector<1x128x128xbf16>,
    %27 = tpu.iota {dimensions = array<i32: 1>} : vector<128x128xi32>
    %28 = vector.broadcast %14 : vector<128x1xf32> to vector<128x128xf32>
    %29 = arith.cmpf oeq, %12, %28 : vector<128x128xf32>
    %c128_i32 = arith.constant 128 : i32
    %30 = vector.broadcast %c128_i32 : i32 to vector<128x128xi32>
    %31 = arith.select %29, %27, %30 : vector<128x128xi1>, vector<128x128xi32>
    %cst_13 = arith.constant dense<2147483647> : vector<128xi32>
    %32 = vector.multi_reduction <minsi>, %31, %cst_13 [1] : vector<128x128xi32> to vector<128xi32>
    %33 = vector.shape_cast %32 : vector<128xi32> to vector<128x1xi32>
    %34 = vector.broadcast %33 : vector<128x1xi32> to vector<128x128xi32>
    %35 = arith.cmpi eq, %27, %34 : vector<128x128xi32>
    %36 = arith.extui %35 : vector<128x128xi1> to vector<128x128xi32>
    %37 = arith.sitofp %36 : vector<128x128xi32> to vector<128x128xf32>
    %38 = arith.truncf %37 : vector<128x128xf32> to vector<128x128xbf16>
    %cst_14 = arith.constant dense<0.000000e+00> : vector<32x128xf32>
    %39 = tpu.matmul %0, %38, %cst_14 {dimension_numbers = #tpu.dot_dimension_numbers<[1], [1], [0], [0], [0, 0, 1, 0], [], []>} : vector<32x128xbf16>, vector<128x128xbf16>, vector<32x128xf32> -> vector<32x128xf32>
    %c0_15 = arith.constant 0 : index
    %c0_16 = arith.constant 0 : index
    %40 = vector.load %arg4[%c0_15, %c0_16] : memref<32x128xbf16, #tpu.memory_space<vmem>>, vector<32x128xbf16>
    %cst_17 = arith.constant dense<0.000000e+00> : vector<32x128xf32>
    %41 = tpu.matmul %40, %38, %cst_17 {dimension_numbers = #tpu.dot_dimension_numbers<[1], [1], [0], [0], [0, 0, 1, 0], [], []>} : vector<32x128xbf16>, vector<128x128xbf16>, vector<32x128xf32> -> vector<32x128xf32>
    %42 = arith.addf %39, %41 : vector<32x128xf32>
    %c0_18 = arith.constant 0 : index
    %c0_19 = arith.constant 0 : index
    %c0_20 = arith.constant 0 : index
    %43 = vector.load %arg7[%c0_18, %c0_19, %c0_20] : memref<1x32x128xf32, #tpu.memory_space<vmem>>, vector<1x32x128xf32>
    %44 = vector.shape_cast %43 : vector<1x32x128xf32> to vector<32x128xf32>
    %45 = vector.shape_cast %42 : vector<32x128xf32> to vector<1x32x128xf32>
    tpu.vector_store %arg7[%c0_18, %c0_19, %c0_20], %45 {strides = array<i32>} : memref<1x32x128xf32, #tpu.memory_space<vmem>>, vector<1x32x128xf32>,
    return
  }
  func.func @transform_0(%arg0: i32, %arg1: i32) -> (i32, i32, i32) {
    %c0_i32 = arith.constant 0 : i32
    %c0_i32_0 = arith.constant 0 : i32
    return %arg0, %c0_i32, %arg1 : i32, i32, i32
  }
  func.func @transform_1(%arg0: i32, %arg1: i32) -> (i32, i32) {
    %c0_i32 = arith.constant 0 : i32
    %c0_i32_0 = arith.constant 0 : i32
    %c0_i32_1 = arith.constant 0 : i32
    return %c0_i32, %c0_i32_0 : i32, i32
  }
  func.func @transform_2(%arg0: i32, %arg1: i32) -> (i32, i32) {
    %c0_i32 = arith.constant 0 : i32
    %c0_i32_0 = arith.constant 0 : i32
    %c0_i32_1 = arith.constant 0 : i32
    return %c0_i32, %c0_i32_0 : i32, i32
  }
  func.func @transform_3(%arg0: i32, %arg1: i32) -> (i32, i32) {
    %c0_i32 = arith.constant 0 : i32
    %c0_i32_0 = arith.constant 0 : i32
    %c0_i32_1 = arith.constant 0 : i32
    return %c0_i32, %c0_i32_0 : i32, i32
  }
  func.func @transform_4(%arg0: i32, %arg1: i32) -> (i32, i32, i32) {
    %c0_i32 = arith.constant 0 : i32
    %c0_i32_0 = arith.constant 0 : i32
    return %arg0, %arg1, %c0_i32 : i32, i32, i32
  }
  func.func @transform_5(%arg0: i32, %arg1: i32) -> (i32, i32, i32) {
    %c0_i32 = arith.constant 0 : i32
    %c0_i32_0 = arith.constant 0 : i32
    return %arg0, %c0_i32, %arg1 : i32, i32, i32
  }
}

</mosaic_0001>

<bundles_post_ra>
// kernel: tpu_custom_call.1
= control target key start
LH: loop header
LB: loop body
LE: loop exit
PB: predicated region body
PF: predicated region fallthrough
CT: control target
= control target key end

     0   :  { %s2875_s0 = inlined_call_operand.hbm [shape: f32[2,32,256], index: 0, kind: input, shape index: {}]   ;;  %s2876_s1 = inlined_call_operand.hbm [shape: bf16[32,128], index: 1, kind: input, shape index: {}]   ;;  %s2877_s2 = inlined_call_operand.hbm [shape: bf16[32,128], index: 2, kind: input, shape index: {}]   ;;  %s2878_s3 = inlined_call_operand.vmem [shape: f32[1,128], index: 3, kind: input, shape index: {}]   ;;  %s2879_s4 = inlined_call_operand.hbm [shape: bf16[2,256,128], index: 4, kind: output, shape index: {0}]   ;;  %s2880_s5 = inlined_call_operand.hbm [shape: f32[2,32,256], index: 5, kind: output, shape index: {1}]  }
   0x1   :  { %2900 = sst [smem:[#allocation28_spill]] %s2876_s1 }
   0x2   :  { %2901 = sst [smem:[#allocation29_spill]] %s2877_s2 }
   0x3   :  { %11 = vsyncpa [#allocation3], 0 }
   0x4   :  { %13 = vsyncpa [#allocation3 + $0x1], 0 }
   0x5   :  { %14 = vsyncpa [#allocation6], 0 }
   0x6   :  { %15 = vsyncpa [#allocation4], 0 }
   0x7   :  { %17 = vsyncpa [#allocation4 + $0x1], 0 }
   0x8   :  { %18 = vsyncpa [#allocation10], 0 }
   0x9   :  { %20 = vsyncpa [#allocation10 + $0x1], 0  ;;  %s2072_s18 = smov 0   ;;  %s2074_s19 = smov 0  }
   0xa   :  { %s2076_s20 = smov 0   ;;  %s2078_s21 = smov 0  }
   0xb   :  { %s2080_s22 = smov 0   ;;  %s2082_s23 = smov 0  }
   0xc   :  { %s2084_s24 = smov 0   ;;  %s2086_s25 = smov 0  }
   0xd LB: > { %2902 = sst [smem:[#allocation15_spill]] %s1996_s18  ;;  %s1361_s26 = sadd.s32 4294967295, %s2024_s25   ;;  %s2024_s25 = sphi %s2086_s25, %s26_s25   ;;  %s2020_s24 = sphi %s2084_s24, %s2949_s24   ;;  %s2016_s23 = sphi %s2082_s23, %s2948_s23   ;;  %s2012_s22 = sphi %s2080_s22, %s2947_s22   ;;  %s2008_s21 = sphi %s2078_s21, %s2946_s21   ;;  %s2004_s20 = sphi %s2076_s20, %s2945_s20   ;;  %s2000_s19 = sphi %s2074_s19, %s2944_s19   ;;  %s1996_s18 = sphi %s2072_s18, %s2943_s18  }
   0xe   : > { %2903 = sst [smem:[#allocation16_spill]] %s2024_s25  ;;  %s1362_s27 = sadd.s32 4294967294, %s2024_s25  }
   0xf   : > { %p54_p0 = scmp.ne.s32.totalorder %s2004_s20, %s2000_s19  ;;  %p55_p1 = scmp.eq.s32.totalorder %s2024_s25, 0 }
  0x10   : > { %p60_p2 = scmp.ne.s32.totalorder %s2000_s19, %s1996_s18  ;;  %p2120_p3 = scmp.eq.s32.totalorder %s1361_s26, 0 }
  0x11   : > { %p149_p4 = scmp.eq.s32.totalorder %s1361_s26, 3  ;;  %p2124_p5 = por %p55_p1, %p54_p0 }
  0x12   : > { %s2904_s29 = scalar_select %p2120_p3, 1, 0 }
  0x13   : > { %p155_p6 = scmp.eq.s32.totalorder %s1362_s27, 3  ;;  %p2130_p7 = por %p2120_p3, %p60_p2 }
  0x14   : > { %p2134_p8 = por %p149_p4, %p54_p0  ;;  %p1363_p10 = scmp.ge.s32.totalorder %s2024_s25, 1 }
  0x15   : > { %s2906_s6 = scalar_select %p2130_p7, 1, 0 }
  0x16   : > { %s2907_s7 = scalar_select %p2134_p8, 1, 0 }
  0x17   : > { %p2138_p9 = por %p155_p6, %p60_p2  ;;  %p190_p11 = scmp.lt.s32.totalorder %s2024_s25, 5 }
  0x18   : > { %s2026_s10 = smov [#allocation5]   ;;  %p1653_p0 = scmp.lt.s32.totalorder %s2024_s25, 4 }
  0x19   : > { %s2908_s8 = scalar_select %p2138_p9, 1, 0 }
  0x1a   : > { %p2144_p12 = pnand %p1363_p10, %p190_p11  ;;  %s202_s11 = sshll.u32 %s2026_s10, 4  ;;  %s2148_s11 = int_to_ptr.vmem [resolvable:$true] %s202_s11 }
  0x1b   : > { %2909 = sst [smem:[#allocation17_spill]] %s2908_s8  ;;  %s2027_s13 = smov [#allocation7]  }
  0x1c   : > { %p1633_p13 = pneg %p2144_p12  ;;  %s215_s14 = sshll.u32 %s2027_s13, 4  ;;  %s2165_s14 = int_to_ptr.vmem [resolvable:$true] %s215_s14 }
  0x1d   : > { %p2161_p2 = pnand %p1653_p0, %p2124_p5  ;;  %s2913_s1 = sld [smem:[#allocation28_spill]] }
  0x1e   : > { %p2155_p1 = pnand %p1633_p13, %p2120_p3 }
  0x20   : > { %p1806_p6 = pneg %p2155_p1 }
  0x23   : > { %s1804_s26 = scalar_lea.hbm %s2913_s1, 256 }
  0x24   : > { %p1805_p4 = scmp.ne.s32.totalorder %s2913_s1, %s1804_s26  ;;  %p1811_p5 = scmp.lt.u32.totalorder %s1804_s26, %s2913_s1 }
  0x26   : > { %p1807_p10 = pnand %p1806_p6, %p1805_p4 }
  0x28   : > { %p1808_p11 = pneg %p1807_p10 }
  0x2a   : > { %p1813_p13 = pnand %p1811_p5, %p1808_p11 }
  0x2c   : > { %1816 = shalt.err (!%p1813_p13)
}
  0x2d   : > { %s1817_s16 = scalar_lea.vmem %s2148_s11, 256  ;;  %p1825_p3 = scmp.lt.s32.totalorder %s2148_s11, %s2148_s11 }
  0x2e   : > { %p1818_p0 = scmp.ne.s32.totalorder %s2148_s11, %s1817_s16  ;;  %p1826_p4 = scmp.lt.s32.totalorder %s1817_s16, %s1817_s16 }
  0x30   : > { %p1820_p9 = pnand %p1818_p0, %p1806_p6  ;;  %p1827_p10 = por %p1826_p4, %p1825_p3 }
  0x32   : > { %p1821_p8 = pneg %p1820_p9 }
  0x34   : > { %p1828_p7 = pnand %p1827_p10, %p1821_p8 }
  0x36   : > { %1831 = shalt.err (!%p1828_p7)
}
  0x37   : > { %s2028_s17 = smov 64   ;;  %s2029_s26 = smov 4  }
  0x38   : > { %1636 = dma.hbm_to_vmem [thread:$0]  (!%p2155_p1), %s2913_s1, 256, %s2148_s11, [#allocation6], %s2028_s17, %s2028_s17, %s2029_s26  }
  0x39   : > { %s2914_s2 = sld [smem:[#allocation29_spill]] }
  0x3f   : > { %s1832_s28 = scalar_lea.hbm %s2914_s2, 256 }
  0x40   : > { %p1833_p3 = scmp.ne.s32.totalorder %s2914_s2, %s1832_s28  ;;  %p1839_p9 = scmp.lt.u32.totalorder %s1832_s28, %s2914_s2 }
  0x42   : > { %p1835_p7 = pnand %p1833_p3, %p1806_p6 }
  0x44   : > { %p1836_p8 = pneg %p1835_p7 }
  0x46   : > { %p1841_p11 = pnand %p1839_p9, %p1836_p8 }
  0x48   : > { %1844 = shalt.err (!%p1841_p11)
}
  0x49   : > { %s1845_s11 = scalar_lea.vmem %s2165_s14, 256  ;;  %p1853_p4 = scmp.lt.s32.totalorder %s2165_s14, %s2165_s14 }
  0x4a   : > { %p1846_p5 = scmp.ne.s32.totalorder %s2165_s14, %s1845_s11  ;;  %p1854_p10 = scmp.lt.s32.totalorder %s1845_s11, %s1845_s11 }
  0x4c   : > { %p1848_p13 = pnand %p1846_p5, %p1806_p6  ;;  %p1855_p3 = por %p1854_p10, %p1853_p4 }
  0x4e   : > { %p1849_p0 = pneg %p1848_p13 }
  0x50   : > { %p1856_p7 = pnand %p1855_p3, %p1849_p0 }
  0x52   : > { %1859 = shalt.err (!%p1856_p7)
}
  0x53   : > { %1639 = dma.hbm_to_vmem [thread:$0]  (!%p2155_p1), %s2914_s2, 256, %s2165_s14, [#allocation6], %s2028_s17, %s2028_s17, %s2029_s26  }
  0x54   : > { %s35_s28 = sadd.s32 1, %s2016_s23  ;;  %s38_s8 = sadd.s32 1, %s2020_s24 }
  0x55   : > { %p36_p6 = scmp.ge.s32.totalorder %s35_s28, 2  ;;  %s232_s27 = sand.u32 1, %s2004_s20  }
  0x56   : > { %s1367_s10 = sshll.u32 %s232_s27, 5  ;;  %s1368_s30 = sshll.u32 %s2020_s24, 3 }
  0x57   : > { %s2951_s28 = smov (%p36_p6, %s35_s28), 0  ;;  %s2953_s8 = smov (!%p36_p6, %s38_s8), %s2020_s24 }
  0x58   : > { %s43_s12 = ssub.s32 %s2016_s23, %s2951_s28  ;;  %p40_p8 = scmp.ge.s32.totalorder %s2953_s8, 2 }
  0x59   : > { %s241_s13 = sadd.s32 %s2016_s23, %s1368_s30  ;;  %s236_s16 = scalar_lea.vmem [#allocation2], %s1367_s10 }
  0x5a   : > { %s244_s14 = sshll.u32 %s236_s16, 4  ;;  %s2955_s8 = smov (%p40_p8, %s2953_s8), 0  ;;  %s2231_s14 = int_to_ptr.vmem [resolvable:$true] %s244_s14 }
  0x5b   : > { %s1369_s17 = sshll.u32 %s241_s13, 7  ;;  %s42_s26 = ssub.s32 %s2020_s24, %s2955_s8 }
  0x5c   : > { %s2238_s25 = scalar_lea.hbm %s2875_s0, %s1369_s17  ;;  %s44_s1 = sor.u32 %s43_s12, %s42_s26 }
  0x5d   : > { %p45_p1 = scmp.eq.s32.totalorder %s44_s1, 0  ;;  %s2915_s10 = sadd.s32 1, %s2004_s20 }
  0x5e   : > { %s2245_s16 = scalar_lea.sflag [#allocation3], %s232_s27  ;;  %s1860_s13 = scalar_lea.hbm %s2238_s25, 512 }
  0x5f   : > { %s2243_s30 = scalar_select %p45_p1, %s2004_s20, %s2915_s10  }
  0x60   : > { %p1861_p9 = scmp.ne.s32.totalorder %s2238_s25, %s1860_s13  ;;  %p1862_p11 = pneg %p2161_p2 }
  0x61   : > { %s1865_s18 = scalar_lea.hbm %s2875_s0, 2048  ;;  %p1866_p0 = scmp.lt.u32.totalorder %s2238_s25, %s2875_s0 }
  0x62   : > { %p1863_p5 = pnand %p1862_p11, %p1861_p9  ;;  %p1867_p4 = scmp.lt.u32.totalorder %s1865_s18, %s1860_s13 }
  0x63   : > { %p1869_p3 = scmp.lt.u32.totalorder %s1860_s13, %s2238_s25 }
  0x64   : > { %p1864_p13 = pneg %p1863_p5  ;;  %p1868_p10 = por %p1867_p4, %p1866_p0 }
  0x66   : > { %p1870_p7 = por %p1869_p3, %p1868_p10 }
  0x68   : > { %p1871_p6 = pnand %p1870_p7, %p1864_p13 }
  0x6a   : > { %1874 = shalt.err (!%p1871_p6)
}
  0x6b   : > { %s1875_s1 = scalar_lea.vmem %s2231_s14, 512  ;;  %s2030_s27 = smov [#allocation2]  }
  0x6c   : > { %p1876_p8 = scmp.ne.s32.totalorder %s2231_s14, %s1875_s1  ;;  %s1880_s26 = sshll.u32 %s2030_s27, 4  ;;  %s1881_s26 = int_to_ptr.vmem [resolvable:$false] %s1880_s26 }
  0x6d   : > { %s1882_s2 = scalar_lea.vmem %s1881_s26, 1024  ;;  %p1883_p5 = scmp.lt.s32.totalorder %s2231_s14, %s1881_s26 }
  0x6e   : > { %p1878_p1 = pnand %p1876_p8, %p1862_p11  ;;  %p1884_p0 = scmp.lt.s32.totalorder %s1882_s2, %s1875_s1 }
  0x70   : > { %p1879_p9 = pneg %p1878_p1  ;;  %p1885_p4 = por %p1884_p0, %p1883_p5 }
  0x72   : > { %p1886_p10 = pnand %p1885_p4, %p1879_p9 }
  0x74   : > { %1889 = shalt.err (!%p1886_p10)
}
  0x75   : > { %s2031_s10 = smov 256   ;;  %s2032_s13 = smov 128  }
  0x76   : > { %s2033_s17 = smov 8   ;;  %256 = sbr.rel (%p2144_p12) target bundleno = 1234 (0x4d2), region = 36 }
  0x77   : > { %1643 = dma.hbm_to_vmem [thread:$0]  (!%p2161_p2), %s2238_s25, 512, %s2231_s14, %s2245_s16, %s2031_s10, %s2032_s13, %s2033_s17  }
  0x7d   : > { %s2276_s11 = sand.u32 1, %s2000_s19   ;;  %p2916_p11 = scmp.ne.s32.totalorder %s2906_s6, 0 }
  0x7e   : > { %s1371_s18 = sshll.u32 %s2276_s11, 5  ;;  %s259_s12 = scalar_lea.sflag [#allocation3], %s2276_s11 }
  0x7f   : > { %s262_s1 = scalar_lea.vmem [#allocation2], %s1371_s18 }
  0x80   : > { %1979 = dma.done.wait (%p2916_p11), %s259_s12, 512  }
  0x81   : > { %1981 = vsyncadd (%p2916_p11), %s259_s12, 4294966784  ;;  %p2917_p2 = scmp.ne.s32.totalorder %s2904_s29, 0 }
  0x83   : > { %1983 = dma.done.wait (%p2917_p2), [#allocation6], 512  }
  0x84   : > { %1985 = vsyncadd (%p2917_p2), [#allocation6], 4294966784  ;;  %v308_v0 = vld [vmem:[%s262_s1] sm:$0xff]  ;;  %v309_v1 = vld [vmem:[%s262_s1 + $0x8] sm:$0xff]  ;;  %vm364_vm0 = vcmask 261120   ;;  %s1374_s9 = sshll.u32 %s2276_s11, 6 }
  0x85   : > { %312 = vxpose.xlu0.b32.start [1/4] (short) %v308_v0, 128  ;;  %v310_v2 = vld [vmem:[%s262_s1 + $0x10] sm:$0xff]  ;;  %v1735_v3 = vld [vmem:[#allocation5] sm:$0xff]   ;;  %v1736_v4 = vld [vmem:[#allocation5 + $0x8] sm:$0xff]   ;;  %s2754_s15 = scalar_lea.vmem [#allocation8], %s1374_s9  ;;  %s1455_s14 = sshll.u32 %s2008_s21, 4 }
  0x86   : > { %1555 = vmatprep.subr.bf16.mxu0 %v1735_v3  ;;  %1611 = vmatprep.mubr.bf16.mxu1 %v1735_v3  ;;  %v311_v5 = vld [vmem:[%s262_s1 + $0x18] sm:$0xff]  ;;  %v1386_v31 = vld [vmem:[%s2878_s3] ss:$0 sm:$0xff]  ;;  %s1456_s25 = sshll.u32 %s2012_s22, 5  ;;  %s1202_s26 = sshll.u32 %s2754_s15, 4  ;;  %s2786_s26 = int_to_ptr.vmem [resolvable:$true] %s1202_s26 }
  0x87   : > { %1556 = vmatpush3.bf16.msra.mxu0 %v1735_v3  ;;  %s1199_s16 = sadd.s32 %s1456_s25, %s1455_s14  ;;  %s1182_s17 = scalar_lea.sflag [#allocation4], %s2276_s11 }
  0x88   : > { %1557 = vmatprep.subr.bf16.mxu0 %v1736_v4  ;;  %s1457_s27 = sshll.u32 %s1199_s16, 6  ;;  %s1890_s12 = scalar_lea.vmem %s2786_s26, 1024 }
  0x89   : > { %313 = vxpose.xlu0.b32.cont [2/4] (short) %v309_v1, 128  ;;  %s2784_s13 = scalar_lea.hbm %s2879_s4, %s1457_s27  ;;  %p1891_p12 = scmp.ne.s32.totalorder %s2786_s26, %s1890_s12 }
  0x8a   : > { %p2938_p13 = scmp.ne.s32.totalorder %s2907_s7, 0  ;;  %s2035_s1 = smov [#allocation8]  }
  0x8b   : > { %1558 = vmatpush3.bf16.msra.mxu0 %v1736_v4  ;;  %s1894_s29 = sshll.u32 %s2035_s1, 4  ;;  %s1895_s29 = int_to_ptr.vmem [resolvable:$false] %s1894_s29 }
  0x8c   : > { %p1892_p3 = pnand %p1891_p12, %p2938_p13  ;;  %s1896_s6 = scalar_lea.vmem %s1895_s29, 2048 }
  0x8d   : > { %314 = vxpose.xlu0.b32.cont [3/4] (short) %v310_v2, 128  ;;  %p1897_p6 = scmp.lt.s32.totalorder %s2786_s26, %s1895_s29  ;;  %p1898_p8 = scmp.lt.s32.totalorder %s1896_s6, %s1890_s12 }
  0x8e   : > { %p1893_p7 = pneg %p1892_p3 }
  0x8f   : > { %p1899_p1 = por %p1898_p8, %p1897_p6 }
  0x91   : > { %315 = vxpose.xlu0.b32.end [4/4] (short) %v311_v5, 128  ;;  %p1900_p9 = pnand %p1899_p1, %p1893_p7 }
 0x105   : > { %v328_v6 = vpop.trf.xlu0 }
 0x109   : > { %v329_v7 = vpop.trf.xlu0 }
 0x10a   : > { %v344_v8 = vpack.c.bf16 %v329_v7, %v328_v6 }
 0x10c   : > { %1559 = vmatprep.mubr.msk.bf16.mxu0 %vm364_vm0, %v344_v8 }
 0x10d   : > { %v330_v9 = vpop.trf.xlu0 }
 0x111   : > { %v331_v10 = vpop.trf.xlu0 }
 0x112   : > { %v345_v11 = vpack.c.bf16 %v331_v10, %v330_v9 }
 0x114   : > { %1560 = vmatmul.mubr.msk.bf16.vlgmr.msra.gmra.mrb[0].mxu0 %vm364_vm0, %v345_v11 }
 0x115   : > { %v332_v12 = vpop.trf.xlu0 }
 0x119   : > { %v333_v13 = vpop.trf.xlu0 }
 0x11a   : > { %v346_v14 = vpack.c.bf16 %v333_v13, %v332_v12 }
 0x11c   : > { %1563 = vmatprep.mubr.msk.bf16.mxu0 %vm364_vm0, %v346_v14 }
 0x11d   : > { %v334_v15 = vpop.trf.xlu0 }
 0x121   : > { %v335_v16 = vpop.trf.xlu0 }
 0x122   : > { %v347_v17 = vpack.c.bf16 %v335_v16, %v334_v15  ;;  %v749_v15 = vlaneseq }
 0x124   : > { %1564 = vmatmul.mubr.msk.bf16.gmra.mrb[4].mxu0 %vm364_vm0, %v347_v17  ;;  %v2349_v16 = vand.u32 127, %v749_v15 }
 0x125   : > { %v336_v18 = vpop.trf.xlu0 }
 0x126   : > { %2923 = vst [vmem:[#allocation23_spill] sm:$0xff] %v2349_v16 }
 0x129   : > { %v337_v19 = vpop.trf.xlu0 }
 0x12a   : > { %v348_v20 = vpack.c.bf16 %v337_v19, %v336_v18 }
 0x12c   : > { %1567 = vmatprep.mubr.msk.bf16.mxu0 %vm364_vm0, %v348_v20 }
 0x12d   : > { %v338_v21 = vpop.trf.xlu0 }
 0x131   : > { %v339_v22 = vpop.trf.xlu0 }
 0x132   : > { %v349_v23 = vpack.c.bf16 %v339_v22, %v338_v21 }
 0x134   : > { %1568 = vmatmul.mubr.msk.bf16.gmra.mrb[8].mxu0 %vm364_vm0, %v349_v23 }
 0x135   : > { %v340_v24 = vpop.trf.xlu0 }
 0x139   : > { %v341_v25 = vpop.trf.xlu0 }
 0x13a   : > { %v350_v26 = vpack.c.bf16 %v341_v25, %v340_v24 }
 0x13c   : > { %1571 = vmatprep.mubr.msk.bf16.mxu0 %vm364_vm0, %v350_v26 }
 0x13d   : > { %v342_v27 = vpop.trf.xlu0 }
 0x141   : > { %v343_v28 = vpop.trf.xlu0 }
 0x142   : > { %v351_v29 = vpack.c.bf16 %v343_v28, %v342_v27 }
 0x144   : > { %1572 = vmatmul.mubr.msk.bf16.gmra.mrb[12].mxu0 %vm364_vm0, %v351_v29 }
 0x1e7   : > { %v1561_v30 = vpop.f32.mrb[0].mxu0 }
 0x1e8   : > { %v423_v32 = vpop.f32.mrb[1].mxu0  ;;  %v488_v38 = vmul.f32 2.0, %v1561_v30 }
 0x1e9   : > { %v486_v33 = vmul.f32 2.0, %v423_v32  ;;  %v1562_v34 = vpop.f32.mrb[2].mxu0 }
 0x1ea   : > { %v426_v35 = vpop.f32.mrb[3].mxu0  ;;  %v2307_v40 = vsub.f32 %v488_v38, %v1386_v31  ;;  %v489_v41 = vmul.f32 2.0, %v1562_v34 }
 0x1eb   : > { %v2301_v36 = vsub.f32 %v486_v33, %v1386_v31  ;;  %v487_v37 = vmul.f32 2.0, %v426_v35 }
 0x1ec   : > { %v2310_v42 = vsub.f32 %v489_v41, %v1386_v31 }
 0x1ed   : > { %525 = vmax.xlane.f32.xlu1 %v2301_v36  ;;  %v2304_v39 = vsub.f32 %v487_v37, %v1386_v31 }
 0x1f1   : > { %527 = vmax.xlane.f32.xlu1 %v2304_v39 }
 0x1f5   : > { %529 = vmax.xlane.f32.xlu1 %v2307_v40 }
 0x1f7   : > { %v1565_v43 = vpop.f32.mrb[4].mxu0 }
 0x1f8   : > { %v439_v44 = vpop.f32.mrb[5].mxu0  ;;  %v492_v50 = vmul.f32 2.0, %v1565_v43 }
 0x1f9   : > { %v490_v45 = vmul.f32 2.0, %v439_v44  ;;  %531 = vmax.xlane.f32.xlu1 %v2310_v42  ;;  %v1566_v46 = vpop.f32.mrb[6].mxu0 }
 0x1fa   : > { %v442_v47 = vpop.f32.mrb[7].mxu0  ;;  %v2319_v52 = vsub.f32 %v492_v50, %v1386_v31  ;;  %v493_v53 = vmul.f32 2.0, %v1566_v46 }
 0x1fb   : > { %v2313_v48 = vsub.f32 %v490_v45, %v1386_v31  ;;  %v491_v49 = vmul.f32 2.0, %v442_v47 }
 0x1fc   : > { %v2322_v54 = vsub.f32 %v493_v53, %v1386_v31 }
 0x1fd   : > { %v2315_v51 = vsub.f32 %v491_v49, %v1386_v31  ;;  %533 = vmax.xlane.f32.xlu0 %v2313_v48 }
 0x1ff   : > { %535 = vmax.xlane.f32.xlu1 %v2315_v51 }
 0x203   : > { %537 = vmax.xlane.f32.xlu1 %v2319_v52 }
 0x207   : > { %539 = vmax.xlane.f32.xlu1 %v2322_v54  ;;  %v1569_v55 = vpop.f32.mrb[8].mxu0 }
 0x208   : > { %v455_v56 = vpop.f32.mrb[9].mxu0  ;;  %v496_v62 = vmul.f32 2.0, %v1569_v55 }
 0x209   : > { %v494_v57 = vmul.f32 2.0, %v455_v56  ;;  %v1570_v58 = vpop.f32.mrb[10].mxu0 }
 0x20a   : > { %v458_v59 = vpop.f32.mrb[11].mxu0  ;;  %v2331_v0 = vsub.f32 %v496_v62, %v1386_v31  ;;  %v497_v1 = vmul.f32 2.0, %v1570_v58 }
 0x20b   : > { %v2325_v60 = vsub.f32 %v494_v57, %v1386_v31  ;;  %v495_v61 = vmul.f32 2.0, %v458_v59 }
 0x20c   : > { %v2334_v2 = vsub.f32 %v497_v1, %v1386_v31 }
 0x20d   : > { %541 = vmax.xlane.f32.xlu1 %v2325_v60  ;;  %v2328_v63 = vsub.f32 %v495_v61, %v1386_v31 }
 0x20e   : > { %2918 = vst [vmem:[#allocation18_spill] sm:$0xff] %v2334_v2 }
 0x211   : > { %543 = vmax.xlane.f32.xlu1 %v2328_v63 }
 0x215   : > { %545 = vmax.xlane.f32.xlu1 %v2331_v0 }
 0x217   : > { %v1573_v3 = vpop.f32.mrb[12].mxu0 }
 0x218   : > { %v471_v4 = vpop.f32.mrb[13].mxu0  ;;  %v500_v10 = vmul.f32 2.0, %v1573_v3 }
 0x219   : > { %v498_v5 = vmul.f32 2.0, %v471_v4  ;;  %547 = vmax.xlane.f32.xlu1 %v2334_v2  ;;  %v1574_v6 = vpop.f32.mrb[14].mxu0 }
 0x21a   : > { %v474_v7 = vpop.f32.mrb[15].mxu0  ;;  %v2343_v12 = vsub.f32 %v500_v10, %v1386_v31  ;;  %v501_v13 = vmul.f32 2.0, %v1574_v6 }
 0x21b   : > { %v2337_v8 = vsub.f32 %v498_v5, %v1386_v31  ;;  %v499_v9 = vmul.f32 2.0, %v474_v7 }
 0x21c   : > { %2921 = vst [vmem:[#allocation21_spill] sm:$0xff] %v2343_v12  ;;  %v2346_v14 = vsub.f32 %v501_v13, %v1386_v31 }
 0x21d   : > { %2919 = vst [vmem:[#allocation19_spill] sm:$0xff] %v2337_v8  ;;  %549 = vmax.xlane.f32.xlu1 %v2337_v8  ;;  %v2340_v11 = vsub.f32 %v499_v9, %v1386_v31 }
 0x21e   : > { %2922 = vst [vmem:[#allocation22_spill] sm:$0xff] %v2346_v14 }
 0x21f   : > { %2920 = vst [vmem:[#allocation20_spill] sm:$0xff] %v2340_v11 }
 0x221   : > { %551 = vmax.xlane.f32.xlu1 %v2340_v11 }
 0x225   : > { %553 = vmax.xlane.f32.xlu1 %v2343_v12 }
 0x229   : > { %555 = vmax.xlane.f32.xlu1 %v2346_v14 }
 0x27a   : > { %v2351_v17 = vpop.xlane.xlu1 %525 }
 0x27b   : > { %vm751_vm1 = vcmp.eq.f32.partialorder %v2301_v36, %v2351_v17 }
 0x27c   : > { %v2356_v18 = vsel %vm751_vm1, %v2349_v16, 128 }
 0x27d   : > { %v784_v19 = vshra.s32 %v2356_v18, 16 }
 0x27e   : > { %v2359_v20 = vpop.xlane.xlu1 %527 }
 0x27f   : > { %vm752_vm2 = vcmp.eq.f32.partialorder %v2304_v39, %v2359_v20  ;;  %v2363_v21 = vcvt.s32.f32 %v784_v19 }
 0x280   : > { %v2366_v22 = vsel %vm752_vm2, %v2349_v16, 128 }
 0x281   : > { %787 = vmin.xlane.f32.xlu1 %v2363_v21  ;;  %v798_v23 = vshra.s32 %v2366_v22, 16 }
 0x282   : > { %v2370_v24 = vpop.xlane.xlu1 %529 }
 0x283   : > { %vm753_vm3 = vcmp.eq.f32.partialorder %v2307_v40, %v2370_v24  ;;  %v2374_v25 = vcvt.s32.f32 %v798_v23 }
 0x284   : > { %v2377_v26 = vsel %vm753_vm3, %v2349_v16, 128 }
 0x285   : > { %801 = vmin.xlane.f32.xlu1 %v2374_v25  ;;  %v812_v27 = vshra.s32 %v2377_v26, 16 }
 0x286   : > { %v2381_v28 = vpop.xlane.xlu1 %531 }
 0x287   : > { %vm754_vm4 = vcmp.eq.f32.partialorder %v2310_v42, %v2381_v28  ;;  %v2385_v29 = vcvt.s32.f32 %v812_v27 }
 0x288   : > { %v2388_v30 = vsel %vm754_vm4, %v2349_v16, 128 }
 0x289   : > { %815 = vmin.xlane.f32.xlu1 %v2385_v29  ;;  %v826_v31 = vshra.s32 %v2388_v30, 16 }
 0x28a   : > { %v2392_v32 = vpop.xlane.xlu0 %533 }
 0x28b   : > { %vm755_vm5 = vcmp.eq.f32.partialorder %v2313_v48, %v2392_v32  ;;  %v2396_v33 = vcvt.s32.f32 %v826_v31 }
 0x28c   : > { %v2399_v34 = vsel %vm755_vm5, %v2349_v16, 128  ;;  %v2401_v35 = vpop.xlane.xlu1 %535 }
 0x28d   : > { %vm756_vm6 = vcmp.eq.f32.partialorder %v2315_v51, %v2401_v35  ;;  %829 = vmin.xlane.f32.xlu1 %v2396_v33  ;;  %v840_v37 = vshra.s32 %v2399_v34, 16 }
 0x28e   : > { %v2408_v38 = vsel %vm756_vm6, %v2349_v16, 128 }
 0x28f   : > { %v2410_v41 = vcvt.s32.f32 %v840_v37  ;;  %v854_v43 = vshra.s32 %v2408_v38, 16 }
 0x290   : > { %v2413_v44 = vpop.xlane.xlu1 %537 }
 0x291   : > { %vm757_vm7 = vcmp.eq.f32.partialorder %v2319_v52, %v2413_v44  ;;  %843 = vmin.xlane.f32.xlu1 %v2410_v41  ;;  %v2421_v46 = vcvt.s32.f32 %v854_v43 }
 0x292   : > { %v2419_v45 = vsel %vm757_vm7, %v2349_v16, 128 }
 0x293   : > { %v868_v47 = vshra.s32 %v2419_v45, 16 }
 0x294   : > { %v2424_v49 = vpop.xlane.xlu1 %539 }
 0x295   : > { %vm758_vm8 = vcmp.eq.f32.partialorder %v2322_v54, %v2424_v49  ;;  %857 = vmin.xlane.f32.xlu1 %v2421_v46  ;;  %v2432_v53 = vcvt.s32.f32 %v868_v47 }
 0x296   : > { %v2430_v50 = vsel %vm758_vm8, %v2349_v16, 128 }
 0x297   : > { %v882_v55 = vshra.s32 %v2430_v50, 16 }
 0x299   : > { %871 = vmin.xlane.f32.xlu1 %v2432_v53  ;;  %v2440_v57 = vcvt.s32.f32 %v882_v55 }
 0x29a   : > { %v2436_v56 = vpop.xlane.xlu1 %541 }
 0x29b   : > { %vm759_vm9 = vcmp.eq.f32.partialorder %v2325_v60, %v2436_v56 }
 0x29c   : > { %v2443_v58 = vsel %vm759_vm9, %v2349_v16, 128 }
 0x29d   : > { %885 = vmin.xlane.f32.xlu1 %v2440_v57  ;;  %v896_v59 = vshra.s32 %v2443_v58, 16 }
 0x29e   : > { %v2447_v61 = vpop.xlane.xlu1 %543 }
 0x29f   : > { %vm760_vm10 = vcmp.eq.f32.partialorder %v2328_v63, %v2447_v61  ;;  %v2451_v62 = vcvt.s32.f32 %v896_v59 }
 0x2a0   : > { %v2454_v1 = vsel %vm760_vm10, %v2349_v16, 128 }
 0x2a1   : > { %899 = vmin.xlane.f32.xlu1 %v2451_v62  ;;  %v910_v3 = vshra.s32 %v2454_v1, 16 }
 0x2a2   : > { %v2458_v4 = vpop.xlane.xlu1 %545 }
 0x2a3   : > { %vm761_vm11 = vcmp.eq.f32.partialorder %v2331_v0, %v2458_v4  ;;  %v2462_v5 = vcvt.s32.f32 %v910_v3 }
 0x2a4   : > { %v2465_v6 = vsel %vm761_vm11, %v2349_v16, 128 }
 0x2a5   : > { %913 = vmin.xlane.f32.xlu1 %v2462_v5  ;;  %v924_v7 = vshra.s32 %v2465_v6, 16 }
 0x2a6   : > { %v2469_v9 = vpop.xlane.xlu1 %547 }
 0x2a7   : > { %vm762_vm12 = vcmp.eq.f32.partialorder %v2334_v2, %v2469_v9  ;;  %v2473_v10 = vcvt.s32.f32 %v924_v7 }
 0x2a8   : > { %v2476_v13 = vsel %vm762_vm12, %v2349_v16, 128 }
 0x2a9   : > { %927 = vmin.xlane.f32.xlu1 %v2473_v10  ;;  %v938_v15 = vshra.s32 %v2476_v13, 16 }
 0x2aa   : > { %v2480_v19 = vpop.xlane.xlu1 %549 }
 0x2ab   : > { %2924 = vst [vmem:[#allocation24_spill] sm:$0xff] %v2480_v19  ;;  %vm763_vm13 = vcmp.eq.f32.partialorder %v2337_v8, %v2480_v19  ;;  %v2484_v23 = vcvt.s32.f32 %v938_v15 }
 0x2ac   : > { %v2487_v27 = vsel %vm763_vm13, %v2349_v16, 128 }
 0x2ad   : > { %941 = vmin.xlane.f32.xlu1 %v2484_v23  ;;  %v952_v31 = vshra.s32 %v2487_v27, 16 }
 0x2ae   : > { %v2491_v37 = vpop.xlane.xlu1 %551 }
 0x2af   : > { %2925 = vst [vmem:[#allocation25_spill] sm:$0xff] %v2491_v37  ;;  %vm764_vm14 = vcmp.eq.f32.partialorder %v2340_v11, %v2491_v37  ;;  %v2495_v43 = vcvt.s32.f32 %v952_v31 }
 0x2b0   : > { %v2498_v47 = vsel %vm764_vm14, %v2349_v16, 128 }
 0x2b1   : > { %955 = vmin.xlane.f32.xlu1 %v2495_v43  ;;  %v966_v55 = vshra.s32 %v2498_v47, 16 }
 0x2b2   : > { %v2502_v59 = vpop.xlane.xlu1 %553 }
 0x2b3   : > { %2926 = vst [vmem:[#allocation26_spill] sm:$0xff] %v2502_v59  ;;  %vm765_vm15 = vcmp.eq.f32.partialorder %v2343_v12, %v2502_v59  ;;  %v2506_v3 = vcvt.s32.f32 %v966_v55  ;;  %v783_v59 = vand.u32 65535, %v2356_v18 }
 0x2b4   : > { %v2509_v7 = vsel %vm765_vm15, %v2349_v16, 128 }
 0x2b5   : > { %969 = vmin.xlane.f32.xlu0 %v2506_v3  ;;  %v980_v15 = vshra.s32 %v2509_v7, 16  ;;  %v785_v19 = vcvt.s32.f32 %v783_v59 }
 0x2b6   : > { %v2513_v31 = vpop.xlane.xlu1 %555 }
 0x2b7   : > { %2927 = vst [vmem:[#allocation27_spill] sm:$0xff] %v2513_v31  ;;  %vm766_vm0 = vcmp.eq.f32.partialorder %v2346_v14, %v2513_v31  ;;  %v2517_v11 = vcvt.s32.f32 %v980_v15  ;;  %v797_v14 = vand.u32 65535, %v2366_v22  ;;  %v825_v22 = vand.u32 65535, %v2388_v30 }
 0x2b8   : > { %v2520_v37 = vsel %vm766_vm0, %v2349_v16, 128  ;;  %v853_v30 = vand.u32 65535, %v2408_v38  ;;  %v881_v38 = vand.u32 65535, %v2430_v50  ;;  %v909_v50 = vand.u32 65535, %v2454_v1 }
 0x2b9   : > { %983 = vmin.xlane.f32.xlu1 %v2517_v11  ;;  %v994_v55 = vshra.s32 %v2520_v37, 16  ;;  %v799_v31 = vcvt.s32.f32 %v797_v14  ;;  %v827_v14 = vcvt.s32.f32 %v825_v22  ;;  %v937_v1 = vand.u32 65535, %v2476_v13 }
 0x2bb   : > { %v2524_v12 = vcvt.s32.f32 %v994_v55  ;;  %v811_v55 = vand.u32 65535, %v2377_v26  ;;  %v839_v26 = vand.u32 65535, %v2399_v34  ;;  %v867_v34 = vand.u32 65535, %v2419_v45 }
 0x2bc   : > { %v895_v45 = vand.u32 65535, %v2443_v58  ;;  %v923_v58 = vand.u32 65535, %v2465_v6  ;;  %v939_v6 = vcvt.s32.f32 %v937_v1 }
 0x2bd   : > { %997 = vmin.xlane.f32.xlu0 %v2524_v12  ;;  %v813_v59 = vcvt.s32.f32 %v811_v55  ;;  %v855_v55 = vcvt.s32.f32 %v853_v30  ;;  %v869_v22 = vcvt.s32.f32 %v867_v34  ;;  %v911_v30 = vcvt.s32.f32 %v909_v50 }
 0x2be   : > { %v557_v34 = vsub.f32 %v2301_v36, %v2351_v17  ;;  %v965_v17 = vand.u32 65535, %v2498_v47  ;;  %v564_v50 = vsub.f32 %v2322_v54, %v2424_v49  ;;  %v566_v54 = vsub.f32 %v2328_v63, %v2447_v61  ;;  %v2929_v61 = vld [vmem:[#allocation24_spill] sm:$0xff] }
 0x30e   : > { %v2528_v8 = vpop.xlane.xlu1 %787 }
 0x30f   : > { %vm789_vm1 = vcmp.eq.f32.partialorder %v2363_v21, %v2528_v8 }
 0x310   : > { %v790_v15 = vsel %vm789_vm1, %v785_v19, inf }
 0x311   : > { %791 = vmin.xlane.f32.xlu1 %v790_v15 }
 0x312   : > { %v2533_v16 = vpop.xlane.xlu1 %801 }
 0x313   : > { %vm803_vm2 = vcmp.eq.f32.partialorder %v2374_v25, %v2533_v16 }
 0x314   : > { %v804_v2 = vsel %vm803_vm2, %v799_v31, inf  ;;  %v841_v31 = vcvt.s32.f32 %v839_v26 }
 0x315   : > { %805 = vmin.xlane.f32.xlu0 %v804_v2 }
 0x316   : > { %v2538_v18 = vpop.xlane.xlu1 %815 }
 0x317   : > { %vm817_vm3 = vcmp.eq.f32.partialorder %v2385_v29, %v2538_v18 }
 0x318   : > { %v818_v21 = vsel %vm817_vm3, %v813_v59, inf }
 0x319   : > { %819 = vmin.xlane.f32.xlu1 %v818_v21 }
 0x31a   : > { %v2543_v19 = vpop.xlane.xlu1 %829 }
 0x31b   : > { %vm831_vm4 = vcmp.eq.f32.partialorder %v2396_v33, %v2543_v19 }
 0x31c   : > { %v832_v25 = vsel %vm831_vm4, %v827_v14, inf  ;;  %v883_v14 = vcvt.s32.f32 %v881_v38  ;;  %v573_v38 = vmul.f32 1.442695, %v557_v34 }
 0x31d   : > { %833 = vmin.xlane.f32.xlu0 %v832_v25  ;;  %v897_v25 = vcvt.s32.f32 %v895_v45  ;;  %v979_v45 = vand.u32 65535, %v2509_v7  ;;  %v993_v7 = vand.u32 65535, %v2520_v37 }
 0x31e   : > { %v2548_v2 = vpop.xlane.xlu1 %843  ;;  %1739 = vpow2.f32 %v573_v38 }
 0x31f   : > { %vm845_vm5 = vcmp.eq.f32.partialorder %v2410_v41, %v2548_v2 }
 0x320   : > { %v846_v29 = vsel %vm845_vm5, %v841_v31, inf }
 0x321   : > { %847 = vmin.xlane.f32.xlu1 %v846_v29 }
 0x322   : > { %v2553_v15 = vpop.xlane.xlu1 %857 }
 0x323   : > { %vm859_vm6 = vcmp.eq.f32.partialorder %v2421_v46, %v2553_v15 }
 0x324   : > { %v860_v33 = vsel %vm859_vm6, %v855_v55, inf  ;;  %v925_v55 = vcvt.s32.f32 %v923_v58  ;;  %v2928_v58 = vld [vmem:[#allocation18_spill] sm:$0xff] }
 0x325   : > { %861 = vmin.xlane.f32.xlu0 %v860_v33 }
 0x326   : > { %v2558_v59 = vpop.xlane.xlu1 %871 }
 0x327   : > { %vm873_vm7 = vcmp.eq.f32.partialorder %v2432_v53, %v2558_v59 }
 0x328   : > { %v874_v41 = vsel %vm873_vm7, %v869_v22, inf  ;;  %v558_v22 = vsub.f32 %v2304_v39, %v2359_v20  ;;  %v560_v39 = vsub.f32 %v2310_v42, %v2381_v28  ;;  %v562_v42 = vsub.f32 %v2315_v51, %v2401_v35  ;;  %v2625_v37 = vpop.eup %1739 }
 0x329   : > { %875 = vmin.xlane.f32.xlu1 %v874_v41 }
 0x32a   : > { %v2563_v21 = vpop.xlane.xlu1 %885  ;;  %v579_v47 = vmul.f32 1.442695, %v560_v39 }
 0x32b   : > { %vm887_vm8 = vcmp.eq.f32.partialorder %v2440_v57, %v2563_v21 }
 0x32c   : > { %v888_v46 = vsel %vm887_vm8, %v883_v14, inf }
 0x32d   : > { %889 = vmin.xlane.f32.xlu0 %v888_v46  ;;  %v981_v46 = vcvt.s32.f32 %v979_v45 }
 0x32e   : > { %v2568_v26 = vpop.xlane.xlu1 %899 }
 0x32f   : > { %vm901_vm9 = vcmp.eq.f32.partialorder %v2451_v62, %v2568_v26 }
 0x330   : > { %v902_v53 = vsel %vm901_vm9, %v897_v25, inf  ;;  %v583_v25 = vmul.f32 1.442695, %v562_v42 }
 0x331   : > { %903 = vmin.xlane.f32.xlu1 %v902_v53  ;;  %v587_v53 = vmul.f32 1.442695, %v564_v50 }
 0x332   : > { %v2573_v31 = vpop.xlane.xlu1 %913 }
 0x333   : > { %vm915_vm10 = vcmp.eq.f32.partialorder %v2462_v5, %v2573_v31  ;;  %v951_v5 = vand.u32 65535, %v2487_v27  ;;  %v575_v27 = vmul.f32 1.442695, %v558_v22  ;;  %v2933_v22 = vld [vmem:[#allocation26_spill] sm:$0xff] }
 0x334   : > { %v916_v57 = vsel %vm915_vm10, %v911_v30, inf }
 0x335   : > { %917 = vmin.xlane.f32.xlu0 %v916_v57  ;;  %v953_v36 = vcvt.s32.f32 %v951_v5  ;;  %1741 = vpow2.f32 %v575_v27  ;;  %v568_v57 = vsub.f32 %v2928_v58, %v2469_v9 }
 0x336   : > { %v2578_v29 = vpop.xlane.xlu1 %927 }
 0x337   : > { %vm929_vm11 = vcmp.eq.f32.partialorder %v2473_v10, %v2578_v29  ;;  %v559_v10 = vsub.f32 %v2307_v40, %v2370_v24  ;;  %v561_v40 = vsub.f32 %v2313_v48, %v2392_v32  ;;  %v967_v24 = vcvt.s32.f32 %v965_v17 }
 0x338   : > { %v930_v62 = vsel %vm929_vm11, %v925_v55, inf  ;;  %v563_v48 = vsub.f32 %v2319_v52, %v2413_v44  ;;  %v565_v52 = vsub.f32 %v2325_v60, %v2436_v56  ;;  %v995_v44 = vcvt.s32.f32 %v993_v7  ;;  %v2930_v55 = vld [vmem:[#allocation19_spill] sm:$0xff] }
 0x339   : > { %931 = vmin.xlane.f32.xlu1 %v930_v62  ;;  %v581_v28 = vmul.f32 1.442695, %v561_v40  ;;  %v567_v56 = vsub.f32 %v2331_v0, %v2458_v4  ;;  %v569_v1 = vsub.f32 %v2930_v55, %v2929_v61  ;;  %v595_v0 = vmul.f32 1.442695, %v568_v57  ;;  %v2931_v4 = vld [vmem:[#allocation25_spill] sm:$0xff]  ;;  %v2937_v61 = vld [vmem:[#allocation23_spill] sm:$0xff] }
 0x33a   : > { %v2585_v33 = vpop.xlane.xlu1 %941  ;;  %v585_v51 = vmul.f32 1.442695, %v563_v48  ;;  %v589_v60 = vmul.f32 1.442695, %v565_v52  ;;  %v836_v57 = vcvt.f32.s32 %v2543_v19 }
 0x33b   : > { %vm943_vm12 = vcmp.eq.f32.partialorder %v2484_v23, %v2585_v33  ;;  %v577_v23 = vmul.f32 1.442695, %v559_v10  ;;  %v593_v63 = vmul.f32 1.442695, %v567_v56  ;;  %v597_v9 = vmul.f32 1.442695, %v569_v1 }
 0x33c   : > { %v944_v13 = vsel %vm943_vm12, %v939_v6, inf  ;;  %v2932_v6 = vld [vmem:[#allocation20_spill] sm:$0xff]  ;;  %v822_v56 = vcvt.f32.s32 %v2538_v18  ;;  %v837_v18 = vshll.u32 %v836_v57, 16  ;;  %v948_v57 = vcvt.f32.s32 %v2585_v33 }
 0x33d   : > { %945 = vmin.xlane.f32.xlu0 %v944_v13  ;;  %1743 = vpow2.f32 %v577_v23  ;;  %v570_v5 = vsub.f32 %v2932_v6, %v2931_v4  ;;  %v2934_v13 = vld [vmem:[#allocation21_spill] sm:$0xff]  ;;  %v2936_v23 = vld [vmem:[#allocation22_spill] sm:$0xff] }
 0x33e   : > { %v2594_v41 = vpop.xlane.xlu1 %955  ;;  %1745 = vpow2.f32 %v579_v47  ;;  %v571_v10 = vsub.f32 %v2934_v13, %v2933_v22 }
 0x33f   : > { %vm957_vm13 = vcmp.eq.f32.partialorder %v2495_v43, %v2594_v41  ;;  %1747 = vpow2.f32 %v581_v28  ;;  %v2630_v49 = vpop.eup %1741  ;;  %v599_v17 = vmul.f32 1.442695, %v570_v5  ;;  %v864_v5 = vcvt.f32.s32 %v2553_v15 }
 0x340   : > { %v958_v14 = vsel %vm957_vm13, %v953_v36, inf  ;;  %1749 = vpow2.f32 %v583_v25  ;;  %v601_v27 = vmul.f32 1.442695, %v571_v10  ;;  %v794_v25 = vcvt.f32.s32 %v2528_v8 }
 0x341   : > { %959 = vmin.xlane.f32.xlu1 %v958_v14  ;;  %1751 = vpow2.f32 %v585_v51  ;;  %v2935_v14 = vld [vmem:[#allocation27_spill] sm:$0xff]  ;;  %v808_v51 = vcvt.f32.s32 %v2533_v16  ;;  %v823_v8 = vshll.u32 %v822_v56, 16  ;;  %v2034_v16 = vmov 1.0|1.0  }
 0x342   : > { %v2603_v20 = vpop.xlane.xlu0 %969  ;;  %1753 = vpow2.f32 %v587_v53  ;;  %v572_v39 = vsub.f32 %v2936_v23, %v2935_v14  ;;  %v878_v15 = vcvt.f32.s32 %v2558_v59  ;;  %v892_v23 = vcvt.f32.s32 %v2563_v21 }
 0x343   : > { %vm971_vm14 = vcmp.eq.f32.partialorder %v2506_v3, %v2603_v20  ;;  %1755 = vpow2.f32 %v589_v60  ;;  %v809_v53 = vshll.u32 %v808_v51, 16  ;;  %v906_v21 = vcvt.f32.s32 %v2568_v26 }
 0x344   : > { %v972_v43 = vsel %vm971_vm14, %v967_v24, inf  ;;  %v603_v45 = vmul.f32 1.442695, %v572_v39  ;;  %v893_v59 = vshll.u32 %v892_v23, 16  ;;  %v962_v33 = vcvt.f32.s32 %v2594_v41 }
 0x345   : > { %973 = vmin.xlane.f32.xlu0 %v972_v43 }
 0x346   : > { %v2612_v32 = vpop.xlane.xlu1 %983 }
 0x347   : > { %vm985_vm15 = vcmp.eq.f32.partialorder %v2517_v11, %v2612_v32  ;;  %v2634_v30 = vpop.eup %1743 }
 0x348   : > { %v986_v3 = vsel %vm985_vm15, %v981_v46, inf  ;;  %v2642_v62 = vpop.eup %1745  ;;  %v1737_v46 = vld [vmem:[#allocation7] sm:$0xff]  }
 0x349   : > { %987 = vmin.xlane.f32.xlu1 %v986_v3  ;;  %v2644_v34 = vpop.eup %1747  ;;  %1591 = vmatprep.mubr.bf16.mxu0 %v1737_v46 }
 0x34a   : > { %v2621_v35 = vpop.xlane.xlu0 %997  ;;  %v2652_v38 = vpop.eup %1749 }
 0x34b   : > { %vm999_vm0 = vcmp.eq.f32.partialorder %v2524_v12, %v2621_v35  ;;  %v591_v12 = vmul.f32 1.442695, %v566_v54  ;;  %v2654_v36 = vpop.eup %1751 }
 0x34c   : > { %v1000_v11 = vsel %vm999_vm0, %v995_v44, inf  ;;  %v2660_v40 = vpop.eup %1753  ;;  %v795_v44 = vshll.u32 %v794_v25, 16 }
 0x34d   : > { %1001 = vmin.xlane.f32.xlu0 %v1000_v11  ;;  %605 = vadd.xlane.f32.xlu1 %v2625_v37  ;;  %1757 = vpow2.f32 %v591_v12  ;;  %v2662_v24 = vpop.eup %1755 }
 0x34e   : > { %1759 = vpow2.f32 %v593_v63 }
 0x34f   : > { %1761 = vpow2.f32 %v595_v0  ;;  %v850_v0 = vcvt.f32.s32 %v2548_v2  ;;  %v865_v2 = vshll.u32 %v864_v5, 16  ;;  %v963_v5 = vshll.u32 %v962_v33, 16 }
 0x350   : > { %1763 = vpow2.f32 %v597_v9 }
 0x351   : > { %607 = vadd.xlane.f32.xlu0 %v2630_v49  ;;  %609 = vadd.xlane.f32.xlu1 %v2634_v30  ;;  %1765 = vpow2.f32 %v599_v17  ;;  %v851_v22 = vshll.u32 %v850_v0, 16 }
 0x352   : > { %1767 = vpow2.f32 %v601_v27 }
 0x353   : > { %1769 = vpow2.f32 %v603_v45  ;;  %v879_v45 = vshll.u32 %v878_v15, 16 }
 0x355   : > { %611 = vadd.xlane.f32.xlu0 %v2642_v62  ;;  %613 = vadd.xlane.f32.xlu1 %v2644_v34 }
 0x357   : > { %v2666_v43 = vpop.eup %1757 }
 0x358   : > { %v2668_v47 = vpop.eup %1759 }
 0x359   : > { %615 = vadd.xlane.f32.xlu0 %v2652_v38  ;;  %617 = vadd.xlane.f32.xlu1 %v2654_v36  ;;  %v2672_v42 = vpop.eup %1761 }
 0x35a   : > { %v2674_v28 = vpop.eup %1763 }
 0x35b   : > { %v2678_v48 = vpop.eup %1765 }
 0x35c   : > { %v2680_v7 = vpop.eup %1767 }
 0x35d   : > { %619 = vadd.xlane.f32.xlu0 %v2660_v40  ;;  %621 = vadd.xlane.f32.xlu1 %v2662_v24  ;;  %v2684_v3 = vpop.eup %1769 }
 0x361   : > { %623 = vadd.xlane.f32.xlu0 %v2666_v43  ;;  %625 = vadd.xlane.f32.xlu1 %v2668_v47 }
 0x365   : > { %627 = vadd.xlane.f32.xlu0 %v2672_v42  ;;  %629 = vadd.xlane.f32.xlu1 %v2674_v28 }
 0x369   : > { %631 = vadd.xlane.f32.xlu0 %v2678_v48  ;;  %633 = vadd.xlane.f32.xlu1 %v2680_v7 }
 0x36d   : > { %635 = vadd.xlane.f32.xlu0 %v2684_v3 }
 0x39e   : > { %v792_v50 = vpop.xlane.xlu1 %791 }
 0x39f   : > { %v793_v52 = vcvt.f32.s32 %v792_v50 }
 0x3a1   : > { %v796_v54 = vadd.s32 %v795_v44, %v793_v52  ;;  %v920_v44 = vcvt.f32.s32 %v2573_v31  ;;  %v934_v31 = vcvt.f32.s32 %v2578_v29  ;;  %v949_v29 = vshll.u32 %v948_v57, 16 }
 0x3a2   : > { %v806_v11 = vpop.xlane.xlu0 %805 }
 0x3a3   : > { %v807_v60 = vcvt.f32.s32 %v806_v11  ;;  %vm1007_vm1 = vcmp.eq.s32.totalorder %v2937_v61, %v796_v54  ;;  %v921_v26 = vshll.u32 %v920_v44, 16 }
 0x3a5   : > { %v810_v12 = vadd.s32 %v809_v53, %v807_v60  ;;  %v907_v53 = vshll.u32 %v906_v21, 16  ;;  %v1738_v21 = vld [vmem:[#allocation7 + $0x8] sm:$0xff]  }
 0x3a6   : > { %v820_v58 = vpop.xlane.xlu1 %819 }
 0x3a7   : > { %v821_v63 = vcvt.f32.s32 %v820_v58  ;;  %vm1008_vm2 = vcmp.eq.s32.totalorder %v2937_v61, %v810_v12 }
 0x3a8   : > { %vm1421_vm3 = vmpackc.low %vm1008_vm2, %vm1007_vm1 }
 0x3a9   : > { %1575 = vmatprep.subr.msk.bf16.mxu0 %vm1421_vm3, %v2034_v16  ;;  %1595 = vmatprep.subr.msk.bf16.mxu1 %vm1421_vm3, %v2034_v16  ;;  %v824_v1 = vadd.s32 %v823_v8, %v821_v63  ;;  %v935_v8 = vshll.u32 %v934_v31, 16 }
 0x3aa   : > { %v834_v55 = vpop.xlane.xlu0 %833  ;;  %1576 = vmatpush3.bf16.xpose.msk.msra.mxu0 %vm1421_vm3, %v2034_v16  ;;  %1596 = vmatpush3.bf16.xpose.msk.msra.mxu1 %vm1421_vm3, %v2034_v16 }
 0x3ab   : > { %v835_v19 = vcvt.f32.s32 %v834_v55  ;;  %vm1009_vm4 = vcmp.eq.s32.totalorder %v2937_v61, %v824_v1 }
 0x3ad   : > { %v838_v4 = vadd.s32 %v837_v18, %v835_v19 }
 0x3ae   : > { %v848_v6 = vpop.xlane.xlu1 %847 }
 0x3af   : > { %v849_v9 = vcvt.f32.s32 %v848_v6  ;;  %vm1010_vm5 = vcmp.eq.s32.totalorder %v2937_v61, %v838_v4  ;;  %v976_v4 = vcvt.f32.s32 %v2603_v20  ;;  %v990_v20 = vcvt.f32.s32 %v2612_v32 }
 0x3b0   : > { %vm1423_vm6 = vmpackc.low %vm1010_vm5, %vm1009_vm4 }
 0x3b1   : > { %1577 = vmatprep.subr.msk.bf16.mxu0 %vm1423_vm6, %v2034_v16  ;;  %1597 = vmatprep.subr.msk.bf16.mxu1 %vm1423_vm6, %v2034_v16  ;;  %v852_v10 = vadd.s32 %v851_v22, %v849_v9  ;;  %v977_v41 = vshll.u32 %v976_v4, 16 }
 0x3b2   : > { %v862_v13 = vpop.xlane.xlu0 %861  ;;  %1578 = vmatpush3.bf16.xpose.msk.msra.mxu0 %vm1423_vm6, %v2034_v16  ;;  %1598 = vmatpush3.bf16.xpose.msk.msra.mxu1 %vm1423_vm6, %v2034_v16 }
 0x3b3   : > { %v863_v17 = vcvt.f32.s32 %v862_v13  ;;  %vm1011_vm7 = vcmp.eq.s32.totalorder %v2937_v61, %v852_v10 }
 0x3b5   : > { %v866_v27 = vadd.s32 %v865_v2, %v863_v17  ;;  %v1004_v17 = vcvt.f32.s32 %v2621_v35 }
 0x3b6   : > { %v876_v14 = vpop.xlane.xlu1 %875 }
 0x3b7   : > { %v877_v39 = vcvt.f32.s32 %v876_v14  ;;  %vm1012_vm8 = vcmp.eq.s32.totalorder %v2937_v61, %v866_v27  ;;  %v991_v27 = vshll.u32 %v990_v20, 16  ;;  %v1005_v23 = vshll.u32 %v1004_v17, 16 }
 0x3b8   : > { %vm1425_vm9 = vmpackc.low %vm1012_vm8, %vm1011_vm7 }
 0x3b9   : > { %1579 = vmatprep.subr.msk.bf16.mxu0 %vm1425_vm9, %v2034_v16  ;;  %1599 = vmatprep.subr.msk.bf16.mxu1 %vm1425_vm9, %v2034_v16  ;;  %v880_v25 = vadd.s32 %v879_v45, %v877_v39 }
 0x3ba   : > { %v890_v46 = vpop.xlane.xlu0 %889  ;;  %1580 = vmatpush3.bf16.xpose.msk.msra.mxu0 %vm1425_vm9, %v2034_v16  ;;  %1600 = vmatpush3.bf16.xpose.msk.msra.mxu1 %vm1425_vm9, %v2034_v16 }
 0x3bb   : > { %v891_v50 = vcvt.f32.s32 %v890_v46  ;;  %vm1013_vm10 = vcmp.eq.s32.totalorder %v2937_v61, %v880_v25 }
 0x3bd   : > { %v894_v51 = vadd.s32 %v893_v59, %v891_v50 }
 0x3be   : > { %v904_v52 = vpop.xlane.xlu1 %903 }
 0x3bf   : > { %v905_v11 = vcvt.f32.s32 %v904_v52  ;;  %vm1014_vm11 = vcmp.eq.s32.totalorder %v2937_v61, %v894_v51 }
 0x3c0   : > { %vm1427_vm12 = vmpackc.low %vm1014_vm11, %vm1013_vm10 }
 0x3c1   : > { %1581 = vmatprep.subr.msk.bf16.mxu0 %vm1427_vm12, %v2034_v16  ;;  %1601 = vmatprep.subr.msk.bf16.mxu1 %vm1427_vm12, %v2034_v16  ;;  %v908_v60 = vadd.s32 %v907_v53, %v905_v11  ;;  %v1803_v11 = vld [vmem:[#allocation5 + $0x8] sm:$0xff]  }
 0x3c2   : > { %v918_v54 = vpop.xlane.xlu0 %917  ;;  %1582 = vmatpush3.bf16.xpose.msk.msra.mxu0 %vm1427_vm12, %v2034_v16  ;;  %1602 = vmatpush3.bf16.xpose.msk.msra.mxu1 %vm1427_vm12, %v2034_v16 }
 0x3c3   : > { %v919_v56 = vcvt.f32.s32 %v918_v54  ;;  %vm1015_vm13 = vcmp.eq.s32.totalorder %v2937_v61, %v908_v60 }
 0x3c5   : > { %v922_v12 = vadd.s32 %v921_v26, %v919_v56 }
 0x3c6   : > { %v932_v58 = vpop.xlane.xlu1 %931 }
 0x3c7   : > { %v933_v63 = vcvt.f32.s32 %v932_v58  ;;  %vm1016_vm14 = vcmp.eq.s32.totalorder %v2937_v61, %v922_v12 }
 0x3c8   : > { %vm1429_vm15 = vmpackc.low %vm1016_vm14, %vm1015_vm13 }
 0x3c9   : > { %1583 = vmatprep.subr.msk.bf16.mxu0 %vm1429_vm15, %v2034_v16  ;;  %1603 = vmatprep.subr.msk.bf16.mxu1 %vm1429_vm15, %v2034_v16  ;;  %v936_v18 = vadd.s32 %v935_v8, %v933_v63 }
 0x3ca   : > { %v946_v55 = vpop.xlane.xlu0 %945  ;;  %1584 = vmatpush3.bf16.xpose.msk.msra.mxu0 %vm1429_vm15, %v2034_v16  ;;  %1604 = vmatpush3.bf16.xpose.msk.msra.mxu1 %vm1429_vm15, %v2034_v16 }
 0x3cb   : > { %v947_v1 = vcvt.f32.s32 %v946_v55  ;;  %vm1017_vm0 = vcmp.eq.s32.totalorder %v2937_v61, %v936_v18 }
 0x3cd   : > { %v950_v19 = vadd.s32 %v949_v29, %v947_v1 }
 0x3ce   : > { %v960_v0 = vpop.xlane.xlu1 %959 }
 0x3cf   : > { %v961_v6 = vcvt.f32.s32 %v960_v0  ;;  %vm1018_vm1 = vcmp.eq.s32.totalorder %v2937_v61, %v950_v19 }
 0x3d0   : > { %vm1431_vm2 = vmpackc.low %vm1018_vm1, %vm1017_vm0 }
 0x3d1   : > { %1585 = vmatprep.subr.msk.bf16.mxu0 %vm1431_vm2, %v2034_v16  ;;  %1605 = vmatprep.subr.msk.bf16.mxu1 %vm1431_vm2, %v2034_v16  ;;  %v964_v22 = vadd.s32 %v963_v5, %v961_v6 }
 0x3d2   : > { %v974_v9 = vpop.xlane.xlu0 %973  ;;  %1586 = vmatpush3.bf16.xpose.msk.msra.mxu0 %vm1431_vm2, %v2034_v16  ;;  %1606 = vmatpush3.bf16.xpose.msk.msra.mxu1 %vm1431_vm2, %v2034_v16 }
 0x3d3   : > { %v975_v13 = vcvt.f32.s32 %v974_v9  ;;  %vm1019_vm3 = vcmp.eq.s32.totalorder %v2937_v61, %v964_v22 }
 0x3d5   : > { %v978_v2 = vadd.s32 %v977_v41, %v975_v13 }
 0x3d6   : > { %v988_v10 = vpop.xlane.xlu1 %987 }
 0x3d7   : > { %v989_v15 = vcvt.f32.s32 %v988_v10  ;;  %vm1020_vm4 = vcmp.eq.s32.totalorder %v2937_v61, %v978_v2 }
 0x3d8   : > { %vm1433_vm5 = vmpackc.low %vm1020_vm4, %vm1019_vm3 }
 0x3d9   : > { %1587 = vmatprep.subr.msk.bf16.mxu0 %vm1433_vm5, %v2034_v16  ;;  %1607 = vmatprep.subr.msk.bf16.mxu1 %vm1433_vm5, %v2034_v16  ;;  %v992_v39 = vadd.s32 %v991_v27, %v989_v15 }
 0x3da   : > { %v1002_v14 = vpop.xlane.xlu0 %1001  ;;  %1588 = vmatpush3.bf16.xpose.msk.msra.mxu0 %vm1433_vm5, %v2034_v16  ;;  %1608 = vmatpush3.bf16.xpose.msk.msra.mxu1 %vm1433_vm5, %v2034_v16  ;;  %v606_v32 = vpop.xlane.xlu1 %605 }
 0x3db   : > { %v1003_v35 = vcvt.f32.s32 %v1002_v14  ;;  %1771 = vrcp.f32 %v606_v32  ;;  %vm1021_vm6 = vcmp.eq.s32.totalorder %v2937_v61, %v992_v39 }
 0x3dd   : > { %v1006_v45 = vadd.s32 %v1005_v23, %v1003_v35 }
 0x3de   : > { %v608_v46 = vpop.xlane.xlu0 %607  ;;  %v610_v59 = vpop.xlane.xlu1 %609 }
 0x3df   : > { %1773 = vrcp.f32 %v608_v46  ;;  %vm1022_vm7 = vcmp.eq.s32.totalorder %v2937_v61, %v1006_v45 }
 0x3e0   : > { %vm1435_vm8 = vmpackc.low %vm1022_vm7, %vm1021_vm6  ;;  %1775 = vrcp.f32 %v610_v59 }
 0x3e1   : > { %1589 = vmatprep.subr.msk.bf16.mxu0 %vm1435_vm8, %v2034_v16  ;;  %1609 = vmatprep.subr.msk.bf16.mxu1 %vm1435_vm8, %v2034_v16 }
 0x3e2   : > { %v612_v25 = vpop.xlane.xlu0 %611  ;;  %1590 = vmatpush3.bf16.xpose.msk.msra.mxu0 %vm1435_vm8, %v2034_v16  ;;  %1610 = vmatpush3.bf16.xpose.msk.msra.mxu1 %vm1435_vm8, %v2034_v16  ;;  %v614_v50 = vpop.xlane.xlu1 %613 }
 0x3e3   : > { %1777 = vrcp.f32 %v612_v25 }
 0x3e4   : > { %1779 = vrcp.f32 %v614_v50 }
 0x3e5   : > { %v1772_v44 = vpop.eup %1771 }
 0x3e6   : > { %v616_v51 = vpop.xlane.xlu0 %615  ;;  %v618_v52 = vpop.xlane.xlu1 %617  ;;  %v653_v53 = vmul.f32 %v1772_v44, %v2625_v37 }
 0x3e7   : > { %1781 = vrcp.f32 %v616_v51 }
 0x3e8   : > { %1783 = vrcp.f32 %v618_v52 }
 0x3e9   : > { %v1774_v61 = vpop.eup %1773  ;;  %1592 = vmatmul.mubr.bf16.vlgmr.msra.gmra.mrb[16].mxu0 %v1738_v21  ;;  %1612 = vmatmul.mubr.bf16.vlgmr.msra.gmra.mrb[0].mxu1 %v1803_v11 }
 0x3ea   : > { %v654_v54 = vmul.f32 %v1774_v61, %v2630_v49  ;;  %v620_v26 = vpop.xlane.xlu0 %619  ;;  %v622_v16 = vpop.xlane.xlu1 %621 }
 0x3eb   : > { %v1776_v60 = vpop.eup %1775  ;;  %1785 = vrcp.f32 %v620_v26 }
 0x3ec   : > { %v1481_v56 = vpack.c.bf16 %v654_v54, %v653_v53  ;;  %1787 = vrcp.f32 %v622_v16  ;;  %v655_v12 = vmul.f32 %v1776_v60, %v2634_v30 }
 0x3ed   : > { %v1778_v31 = vpop.eup %1777 }
 0x3ee   : > { %1482 = vst [vmem:[%s2754_s15] sm:$0xff] %v1481_v56   ;;  %v656_v58 = vmul.f32 %v1778_v31, %v2642_v62  ;;  %v624_v57 = vpop.xlane.xlu0 %623  ;;  %v626_v37 = vpop.xlane.xlu1 %625 }
 0x3ef   : > { %v1780_v49 = vpop.eup %1779  ;;  %1789 = vrcp.f32 %v624_v57 }
 0x3f0   : > { %v1486_v63 = vpack.c.bf16 %v656_v58, %v655_v12  ;;  %1791 = vrcp.f32 %v626_v37  ;;  %v657_v55 = vmul.f32 %v1780_v49, %v2644_v34 }
 0x3f1   : > { %v1782_v8 = vpop.eup %1781 }
 0x3f2   : > { %1518 = vst [vmem:[%s2754_s15 + $0x8] sm:$0xff] %v1486_v63   ;;  %v658_v29 = vmul.f32 %v1782_v8, %v2652_v38  ;;  %v628_v18 = vpop.xlane.xlu0 %627  ;;  %v630_v1 = vpop.xlane.xlu1 %629 }
 0x3f3   : > { %v1784_v33 = vpop.eup %1783  ;;  %1793 = vrcp.f32 %v628_v18 }
 0x3f4   : > { %v1491_v30 = vpack.c.bf16 %v658_v29, %v657_v55  ;;  %1795 = vrcp.f32 %v630_v1  ;;  %v659_v19 = vmul.f32 %v1784_v33, %v2654_v36 }
 0x3f5   : > { %v1786_v62 = vpop.eup %1785 }
 0x3f6   : > { %1519 = vst [vmem:[%s2754_s15 + $0x10] sm:$0xff] %v1491_v30   ;;  %v660_v0 = vmul.f32 %v1786_v62, %v2660_v40  ;;  %v632_v4 = vpop.xlane.xlu0 %631  ;;  %v634_v6 = vpop.xlane.xlu1 %633 }
 0x3f7   : > { %v1788_v5 = vpop.eup %1787  ;;  %1797 = vrcp.f32 %v632_v4 }
 0x3f8   : > { %v1496_v34 = vpack.c.bf16 %v660_v0, %v659_v19  ;;  %1799 = vrcp.f32 %v634_v6  ;;  %v661_v9 = vmul.f32 %v1788_v5, %v2662_v24 }
 0x3f9   : > { %v1790_v38 = vpop.eup %1789 }
 0x3fa   : > { %1520 = vst [vmem:[%s2754_s15 + $0x18] sm:$0xff] %v1496_v34   ;;  %v662_v41 = vmul.f32 %v1790_v38, %v2666_v43  ;;  %v636_v22 = vpop.xlane.xlu0 %635  ;;  %v1792_v13 = vpop.eup %1791 }
 0x3fb   : > { %1801 = vrcp.f32 %v636_v22  ;;  %v663_v20 = vmul.f32 %v1792_v13, %v2668_v47 }
 0x3fc   : > { %v1501_v36 = vpack.c.bf16 %v662_v41, %v661_v9 }
 0x3fd   : > { %v1794_v40 = vpop.eup %1793 }
 0x3fe   : > { %1521 = vst [vmem:[%s2754_s15 + $0x20] sm:$0xff] %v1501_v36   ;;  %v664_v2 = vmul.f32 %v1794_v40, %v2672_v42  ;;  %v1796_v10 = vpop.eup %1795 }
 0x3ff   : > { %v665_v24 = vmul.f32 %v1796_v10, %v2674_v28 }
 0x400   : > { %v1506_v17 = vpack.c.bf16 %v664_v2, %v663_v20 }
 0x401   : > { %v1798_v15 = vpop.eup %1797 }
 0x402   : > { %1522 = vst [vmem:[%s2754_s15 + $0x28] sm:$0xff] %v1506_v17   ;;  %v666_v43 = vmul.f32 %v1798_v15, %v2678_v48  ;;  %v1800_v27 = vpop.eup %1799 }
 0x403   : > { %v667_v47 = vmul.f32 %v1800_v27, %v2680_v7 }
 0x404   : > { %v1511_v14 = vpack.c.bf16 %v666_v43, %v665_v24 }
 0x405   : > { %v1802_v32 = vpop.eup %1801 }
 0x406   : > { %1523 = vst [vmem:[%s2754_s15 + $0x30] sm:$0xff] %v1511_v14   ;;  %v668_v42 = vmul.f32 %v1802_v32, %v2684_v3 }
 0x408   : > { %v1516_v23 = vpack.c.bf16 %v668_v42, %v667_v47 }
 0x40a   : > { %1524 = vst [vmem:[%s2754_s15 + $0x38] sm:$0xff] %v1516_v23  }
 0x40b   : > { %1903 = shalt.err (!%p1900_p9)
}
 0x40c   : > { %s1904_s9 = scalar_lea.hbm %s2784_s13, 1024  ;;  %s1908_s25 = scalar_lea.hbm %s2879_s4, 4096 }
 0x40d   : > { %p1905_p5 = scmp.ne.s32.totalorder %s2784_s13, %s1904_s9  ;;  %p1909_p10 = scmp.lt.u32.totalorder %s2784_s13, %s2879_s4 }
 0x40e   : > { %p1910_p11 = scmp.lt.u32.totalorder %s1908_s25, %s1904_s9  ;;  %p1912_p12 = scmp.lt.u32.totalorder %s1904_s9, %s2784_s13 }
 0x40f   : > { %p1906_p0 = pnand %p1905_p5, %p2938_p13 }
 0x410   : > { %p1911_p2 = por %p1910_p11, %p1909_p10 }
 0x411   : > { %p1907_p4 = pneg %p1906_p0 }
 0x412   : > { %p1913_p3 = por %p1912_p12, %p1911_p2 }
 0x414   : > { %p1914_p7 = pnand %p1913_p3, %p1907_p4 }
 0x416   : > { %1917 = shalt.err (!%p1914_p7)
}
 0x417   : > { %s2036_s2 = smov 64   ;;  %s2037_s10 = smov 4  }
 0x418   : > { %1629 = dma.vmem_to_hbm [thread:$0]  (%p2938_p13), %s2786_s26, 1024, %s2784_s13, %s1182_s17, %s2036_s2, %s2036_s2, %s2037_s10  }
 0x419   : > { %s1458_s12 = sshll.u32 %s2012_s22, 3  ;;  %s301_s29 = scalar_lea.vmem [#allocation9], %s1371_s18 }
 0x41a   : > { %s1216_s1 = sadd.s32 %s2008_s21, %s1458_s12  ;;  %s1219_s6 = sshll.u32 %s301_s29, 4  ;;  %s2816_s6 = int_to_ptr.vmem [resolvable:$true] %s1219_s6 }
 0x41b   : > { %s1459_s9 = sshll.u32 %s1216_s1, 7  ;;  %s1187_s26 = scalar_lea.sflag [#allocation10], %s2276_s11 }
 0x41c   : > { %s2821_s18 = scalar_lea.hbm %s2880_s5, %s1459_s9  ;;  %s1918_s13 = scalar_lea.vmem %s2816_s6, 512 }
 0x41d   : > { %p1919_p6 = scmp.ne.s32.totalorder %s2816_s6, %s1918_s13  ;;  %s2038_s17 = smov [#allocation9]  }
 0x41e   : > { %s1922_s15 = sshll.u32 %s2038_s17, 4  ;;  %s1923_s15 = int_to_ptr.vmem [resolvable:$false] %s1922_s15 }
 0x41f   : > { %p1920_p8 = pnand %p1919_p6, %p2938_p13  ;;  %s1924_s14 = scalar_lea.vmem %s1923_s15, 1024 }
 0x420   : > { %p1925_p9 = scmp.lt.s32.totalorder %s2816_s6, %s1923_s15  ;;  %p1926_p5 = scmp.lt.s32.totalorder %s1924_s14, %s1918_s13 }
 0x421   : > { %p1921_p1 = pneg %p1920_p8 }
 0x422   : > { %p1927_p0 = por %p1926_p5, %p1925_p9 }
 0x424   : > { %p1928_p4 = pnand %p1927_p0, %p1921_p1 }
 0x4bc   : > { %v1593_v28 = vpop.f32.mrb[16].mxu0  ;;  %v1613_v48 = vpop.f32.mrb[0].mxu1 }
 0x4bd   : > { %v1171_v7 = vadd.f32 %v1613_v48, %v1593_v28  ;;  %v1113_v3 = vpop.f32.mrb[17].mxu0  ;;  %v1162_v39 = vpop.f32.mrb[1].mxu1 }
 0x4be   : > { %v1163_v35 = vadd.f32 %v1162_v39, %v1113_v3  ;;  %v1594_v45 = vpop.f32.mrb[18].mxu0  ;;  %v1614_v46 = vpop.f32.mrb[2].mxu1 }
 0x4bf   : > { %1179 = vst [vmem:[%s301_s29 + $0x10] sm:$0xff] %v1171_v7  ;;  %v1174_v59 = vadd.f32 %v1614_v46, %v1594_v45  ;;  %v1116_v25 = vpop.f32.mrb[19].mxu0  ;;  %v1165_v50 = vpop.f32.mrb[3].mxu1 }
 0x4c0   : > { %1177 = vst [vmem:[%s301_s29] sm:$0xff] %v1163_v35  ;;  %v1166_v21 = vadd.f32 %v1165_v50, %v1116_v25 }
 0x4c1   : > { %1180 = vst [vmem:[%s301_s29 + $0x18] sm:$0xff] %v1174_v59 }
 0x4c2   : > { %1178 = vst [vmem:[%s301_s29 + $0x8] sm:$0xff] %v1166_v21 }
 0x4c3   : > { %1931 = shalt.err (!%p1928_p4)
}
 0x4c4   : > { %s1932_s25 = scalar_lea.hbm %s2821_s18, 512  ;;  %s1936_s2 = scalar_lea.hbm %s2880_s5, 2048 }
 0x4c5   : > { %p1933_p10 = scmp.ne.s32.totalorder %s2821_s18, %s1932_s25  ;;  %p1937_p12 = scmp.lt.u32.totalorder %s2821_s18, %s2880_s5 }
 0x4c6   : > { %p1938_p3 = scmp.lt.u32.totalorder %s1936_s2, %s1932_s25  ;;  %p1940_p6 = scmp.lt.u32.totalorder %s1932_s25, %s2821_s18 }
 0x4c7   : > { %p1934_p11 = pnand %p1933_p10, %p2938_p13 }
 0x4c8   : > { %p1939_p7 = por %p1938_p3, %p1937_p12 }
 0x4c9   : > { %p1935_p2 = pneg %p1934_p11 }
 0x4ca   : > { %p1941_p8 = por %p1940_p6, %p1939_p7 }
 0x4cc   : > { %p1942_p1 = pnand %p1941_p8, %p1935_p2 }
 0x4ce   : > { %1945 = shalt.err (!%p1942_p1)
}
 0x4cf   : > { %s2039_s1 = smov 128   ;;  %s2040_s29 = smov 256  }
 0x4d0   : > { %s2041_s9 = smov 8  }
 0x4d1   : > { %1630 = dma.vmem_to_hbm [thread:$0]  (%p2938_p13), %s2816_s6, 512, %s2821_s18, %s1187_s26, %s2039_s1, %s2040_s29, %s2041_s9  }
 0x4d2 PF: > { %s2939_s21 = sld [smem:[#allocation16_spill]]  ;;  %s2940_s22 = sld [smem:[#allocation15_spill]] }
 0x4d3   : > { %s2941_s13 = sld [smem:[#allocation17_spill]] }
 0x4d8   : > { %p1656_p9 = scmp.ge.s32.totalorder %s2939_s21, 2  ;;  %s1234_s17 = sand.u32 1, %s2940_s22  }
 0x4d9   : > { %p2942_p5 = scmp.ne.s32.totalorder %s2941_s13, 0  ;;  %s1235_s15 = scalar_lea.sflag [#allocation4], %s1234_s17 }
 0x4db   : > { %p1645_p0 = pnand %p1656_p9, %p2942_p5 }
 0x4dd   : > { %1987 = dma.done.wait (!%p1645_p0), %s1235_s15, 1024  }
 0x4de   : > { %1989 = vsyncadd (!%p1645_p0), %s1235_s15, 4294966272  ;;  %s1244_s14 = scalar_lea.sflag [#allocation10], %s1234_s17 }
 0x4df   : > { %1991 = dma.done.wait (!%p1645_p0), %s1244_s14, 512  }
 0x4e0   : > { %1993 = vsyncadd (!%p1645_p0), %s1244_s14, 4294966784  ;;  %s26_s25 = sadd.s32 1, %s2939_s21   ;;  %s2943_s18 = smov %s2000_s19 }
 0x4e1   : > { %p23_p4 = scmp.ge.s32.totalorder %s26_s25, 6   ;;  %s2944_s19 = smov %s2004_s20 }
 0x4e2   : > { %s2945_s20 = smov %s2243_s30  ;;  %s2946_s21 = smov %s2016_s23 }
 0x4e3   : > { %s2947_s22 = smov %s2020_s24  ;;  %s2948_s23 = smov %s2951_s28 }
 0x4e4   : > { %s2949_s24 = smov %s2955_s8  ;;  %25 = sbr.rel (!%p23_p4) target bundleno = 13 (0xd), region = 106 }
 0x4eb   :  { %1249 = vsyncpa [#allocation3], 1 }
 0x4ec   :  { %1251 = vsyncpa [#allocation3 + $0x1], 1 }
 0x4ed   :  { %1252 = vsyncpa [#allocation6], 1 }
 0x4ee   :  { %1253 = vsyncpa [#allocation4], 1 }
 0x4ef   :  { %1255 = vsyncpa [#allocation4 + $0x1], 1 }
 0x4f0   :  { %1256 = vsyncpa [#allocation10], 1 }
 0x4f1   :  { %1258 = vsyncpa [#allocation10 + $0x1], 1 }

</bundles_post_ra>
